<compile_context>
chip_gen: v5e
topology: v5e:2x2
jax: 0.10.0
libtpu: 0.0.40
codegen_flags: <defaults>
</compile_context>

<pallas_src>
import functools

import jax
import jax.numpy as jnp
from jax.experimental import pallas as pl
from jax.experimental.pallas import tpu as pltpu

GEM_EPS = 1e-6
GEM_P = 3.0
LANE = 128


def _pow_static(x, p):
    """x ** p with x > 0 and p a static Python float (VPU path for small ints)."""
    if p == 3.0:
        return x * x * x
    if p == 2.0:
        return x * x
    return jnp.exp(p * jnp.log(x))


def _silu(y):
    """SiLU via the tanh form: one EUP push, exact sigmoid."""
    return y * (0.5 * (1.0 + jnp.tanh(0.5 * y)))


# ----------------------------------------------------------------------------- #
# Kernel 1: fused backbone stand-in (1x1 conv + SiLU) and GeM pooling.
# ----------------------------------------------------------------------------- #
def fused_stem_gem_kernel(
    x_ref,      # (1, C_in, TILE_S) bf16 VMEM   input rows (batch b, spatial tile s)
    wt_ref,     # (C_feat, C_in) bf16 VMEM      stem 1x1-conv weight, pre-transposed
    b_ref,      # (C_feat, 1) f32 VMEM          stem bias (broadcast along lanes)
    o_ref,      # (1, C_feat, 1) f32 VMEM       GeM-pooled features for batch b
    acc_ref,    # (C_feat, TILE_S) f32 VMEM     per-lane partial sums of clamp^p
    *,
    p,            # static python float: GeM p
    inv_spatial,  # static python float: 1 / (H*W)
):
    s = pl.program_id(1)

    @pl.when(s == 0)
    def _init():
        acc_ref[...] = jnp.zeros_like(acc_ref)

    # Backbone stand-in: per-pixel 1x1 conv (C_in -> C_feat) + SiLU.  K = C_in is
    # tiny for the MXU, but the kernel is DMA/VPU bound and N = tile_s is lane/MXU
    # dense in this layout.
    xt = x_ref[0]                                                    # (C_in, TILE_S)
    y = jnp.dot(wt_ref[...], xt, preferred_element_type=jnp.float32)
    y = y + b_ref[...]                                               # (C_feat, TILE_S) f32
    y = _silu(y)

    # GeM accumulation: per-lane partial sums of clamp(y, eps)^p -- VALU adds only,
    # no per-step cross-lane reduce.
    xc = jnp.maximum(y, GEM_EPS)
    acc_ref[...] += _pow_static(xc, p)

    # Finalize once per batch: one XLU lane-reduce + the 1/p root.
    @pl.when(s == pl.num_programs(1) - 1)
    def _finalize():
        pooled = jnp.sum(acc_ref[...], axis=-1, keepdims=True) * inv_spatial  # (C_feat, 1)
        # pooled >= eps^p > 0, safe for log.
        o_ref[0] = jnp.exp(jnp.log(pooled) * (1.0 / p))


# ----------------------------------------------------------------------------- #
# Kernel 2: classifier head, batched over all B rows at once.
# ----------------------------------------------------------------------------- #
def head_kernel(g_ref, w1_ref, b1_ref, w2_ref, b2_ref, o_ref):
    h = jnp.dot(g_ref[...], w1_ref[...], preferred_element_type=jnp.float32)
    h = _silu(h + b1_ref[...])
    # Dropout(0.3) == identity in eval mode.
    o_ref[...] = (
        jnp.dot(h, w2_ref[...], preferred_element_type=jnp.float32) + b2_ref[...]
    )


def _choose_spatial_tile(s):
    # Largest lane-multiple tile that divides S (n_s == 1 allowed); per-grid-step
    # overhead (~0.35us) is amortized by big tiles, and even tile_s = 2048 keeps the
    # bf16 x tile <= 16 KiB per buffer and the f32 scratch <= 1 MiB.
    for t in (2048, 1024, 512, 256, 128):
        if s % t == 0:
            return t
    return s  # full spatial extent (satisfies the "equal to full dim" rule)


def net_classifier_forward(x_nchw, params, *, gem_p=GEM_P):
    B, C_in, H, W = x_nchw.shape
    S = H * W
    C_feat = params["stem_w"].shape[1]
    hidden = params["w1"].shape[1]
    num_classes = params["w2"].shape[1]
    c_out_pad = max(LANE, pl.cdiv(num_classes, LANE) * LANE)

    # Native NCHW layout: free reshape, spatial on the 128-lane axis.  Only the
    # streamed x (and the MXU stem weight) go to bf16; everything else stays f32.
    x_rows = x_nchw.reshape(B, C_in, S).astype(jnp.bfloat16)
    wt = params["stem_w"].T.astype(jnp.bfloat16)                  # (C_feat, C_in)
    sb = params["stem_b"].reshape(C_feat, 1).astype(jnp.float32)  # (C_feat, 1)

    tile_s = _choose_spatial_tile(S)
    n_s = S // tile_s

    stem_kernel = functools.partial(
        fused_stem_gem_kernel, p=float(gem_p), inv_spatial=1.0 / float(S))

    pooled = pl.pallas_call(
        stem_kernel,
        out_shape=jax.ShapeDtypeStruct((B, C_feat, 1), jnp.float32),
        grid=(B, n_s),
        in_specs=[
            pl.BlockSpec((1, C_in, tile_s), lambda b, s: (b, 0, s)),   # x (lane-dense)
            pl.BlockSpec((C_feat, C_in), lambda b, s: (0, 0)),         # stem_w^T
            pl.BlockSpec((C_feat, 1), lambda b, s: (0, 0)),            # stem_b
        ],
        out_specs=pl.BlockSpec((1, C_feat, 1), lambda b, s: (b, 0, 0)),
        scratch_shapes=[pltpu.VMEM((C_feat, tile_s), jnp.float32)],
        compiler_params=pltpu.CompilerParams(
            # Batch axis -> megacore-parallel (v7x needs B >= 2 per chip to use both
            # TCs); spatial reduction axis is last and "arbitrary" (accumulator +
            # output block carried across it).
            dimension_semantics=("parallel", "arbitrary"),
            vmem_limit_bytes=32 * 1024 * 1024,
        ),
    )(x_rows, wt, sb)

    g = pooled.reshape(B, C_feat)

    # Lane-dense padding of the classifier output (num_classes -> 128); extra
    # columns have zero weight/bias and are sliced off below.
    w1 = params["w1"].astype(jnp.float32)
    b1 = params["b1"].reshape(1, hidden).astype(jnp.float32)
    w2p = jnp.zeros((hidden, c_out_pad), jnp.float32).at[:, :num_classes].set(
        params["w2"])
    b2p = jnp.zeros((1, c_out_pad), jnp.float32).at[:, :num_classes].set(
        params["b2"])

    logits_pad = pl.pallas_call(
        head_kernel,
        out_shape=jax.ShapeDtypeStruct((B, c_out_pad), jnp.float32),
        grid=(1,),
        in_specs=[
            pl.BlockSpec((B, C_feat), lambda i: (0, 0)),
            pl.BlockSpec((C_feat, hidden), lambda i: (0, 0)),
            pl.BlockSpec((1, hidden), lambda i: (0, 0)),
            pl.BlockSpec((hidden, c_out_pad), lambda i: (0, 0)),
            pl.BlockSpec((1, c_out_pad), lambda i: (0, 0)),
        ],
        out_specs=pl.BlockSpec((B, c_out_pad), lambda i: (0, 0)),
    )(g, w1, b1, w2p, b2p)

    return logits_pad[:, :num_classes]


def _reference_forward(x_nchw, params, p=GEM_P):
    """Pure-JAX reference with the same precision policy (bf16 streamed x / stem_w,
    f32 math) for the correctness check."""
    B, C_in, H, W = x_nchw.shape
    hi = jax.lax.Precision.HIGHEST
    xb = x_nchw.reshape(B, C_in, H * W).astype(jnp.bfloat16).astype(jnp.float32)
    wb = params["stem_w"].astype(jnp.bfloat16).astype(jnp.float32)   # (C_in, C_feat)
    y = jnp.einsum("bcs,cf->bfs", xb, wb, precision=hi)
    y = y + params["stem_b"].reshape(1, -1, 1)
    y = y * jax.nn.sigmoid(y)
    pooled = jnp.mean(jnp.maximum(y, GEM_EPS) ** p, axis=-1)         # (B, C_feat)
    g = pooled ** (1.0 / p)
    h = jnp.dot(g, params["w1"], precision=hi) + params["b1"]
    h = h * jax.nn.sigmoid(h)
    return jnp.dot(h, params["w2"], precision=hi) + params["b2"]


def init_params(key, c_in=4, c_feat=128, hidden=512, num_classes=5):
    k = jax.random.split(key, 6)
    return {
        "stem_w": 0.1 * jax.random.normal(k[0], (c_in, c_feat), jnp.float32),
        "stem_b": 0.1 * jax.random.normal(k[1], (1, c_feat), jnp.float32),
        "w1": 0.05 * jax.random.normal(k[2], (c_feat, hidden), jnp.float32),
        "b1": 0.05 * jax.random.normal(k[3], (1, hidden), jnp.float32),
        "w2": 0.05 * jax.random.normal(k[4], (hidden, num_classes), jnp.float32),
        "b2": 0.05 * jax.random.normal(k[5], (1, num_classes), jnp.float32),
    }


if __name__ == "__main__":
    key = jax.random.PRNGKey(0)
    k_x, k_p = jax.random.split(key)

    B, C_in, H, W = 2, 4, 16, 16
    x = jax.random.normal(k_x, (B, C_in, H, W), jnp.float32)
    # Stand-in backbone feature width chosen lane-dense (128).
    params = init_params(k_p, c_in=C_in, c_feat=128, hidden=512, num_classes=5)

    fwd = jax.jit(net_classifier_forward)
    out = jax.block_until_ready(fwd(x, params))

    assert out.shape == (B, 5), out.shape
    assert bool(jnp.all(jnp.isfinite(out)))

    ref = _reference_forward(x, params)
    max_err = float(jnp.max(jnp.abs(out - ref)))
    assert max_err < 5e-3, f"max abs error vs reference: {max_err}"

    print("KERNEL_OK")
</pallas_src>

<mosaic_0001>
module attributes {stable_mosaic.version = 11 : i64} {
  func.func @fused_stem_gem_kernel(%arg0: i32, %arg1: i32, %arg2: memref<1x4x256xbf16, #tpu.memory_space<vmem>>, %arg3: memref<128x4xbf16, #tpu.memory_space<vmem>>, %arg4: memref<128x1xf32, #tpu.memory_space<vmem>>, %arg5: memref<1x128x1xf32, #tpu.memory_space<vmem>>, %arg6: memref<128x256xf32, #tpu.memory_space<vmem>>) attributes {dimension_semantics = [#tpu.dimension_semantics<parallel>, #tpu.dimension_semantics<arbitrary>], iteration_bounds = array<i64: 2, 1>, scalar_prefetch = 0 : i64, scratch_operands = 1 : i64, tpu.core_type = #tpu.core_type<tc>, window_params = [{transform_indices = @transform_0, window_bounds = array<i64: 1, 4, 256>}, {pipeline_mode = #tpu.pipeline_mode<synchronous>, transform_indices = @transform_1, window_bounds = array<i64: 128, 4>}, {pipeline_mode = #tpu.pipeline_mode<synchronous>, transform_indices = @transform_2, window_bounds = array<i64: 128, 1>}, {transform_indices = @transform_3, window_bounds = array<i64: 1, 128, 1>}]} {
    %c0_i32 = arith.constant 0 : i32
    %0 = arith.cmpi eq, %arg1, %c0_i32 : i32
    %1 = arith.extui %0 : i1 to i32
    %c0_i32_0 = arith.constant 0 : i32
    %2 = arith.cmpi ne, %1, %c0_i32_0 : i32
    scf.if %2 {
      %cst_17 = arith.constant 0.000000e+00 : f32
      %28 = vector.broadcast %cst_17 : f32 to vector<128x256xf32>
      %c0_18 = arith.constant 0 : index
      %c0_19 = arith.constant 0 : index
      %29 = vector.load %arg6[%c0_18, %c0_19] : memref<128x256xf32, #tpu.memory_space<vmem>>, vector<128x256xf32>
      tpu.vector_store %arg6[%c0_18, %c0_19], %28 {strides = array<i32>} : memref<128x256xf32, #tpu.memory_space<vmem>>, vector<128x256xf32>,
    } else {
    }
    %c0 = arith.constant 0 : index
    %c0_1 = arith.constant 0 : index
    %c0_2 = arith.constant 0 : index
    %3 = vector.load %arg2[%c0, %c0_1, %c0_2] : memref<1x4x256xbf16, #tpu.memory_space<vmem>>, vector<1x4x256xbf16>
    %4 = vector.shape_cast %3 : vector<1x4x256xbf16> to vector<4x256xbf16>
    %c0_3 = arith.constant 0 : index
    %c0_4 = arith.constant 0 : index
    %5 = vector.load %arg3[%c0_3, %c0_4] : memref<128x4xbf16, #tpu.memory_space<vmem>>, vector<128x4xbf16>
    %cst = arith.constant dense<0.000000e+00> : vector<128x256xf32>
    %6 = tpu.matmul %5, %4, %cst {dimension_numbers = #tpu.dot_dimension_numbers<[1], [0], [0], [1], [0, 0, 1, 1], [], []>} : vector<128x4xbf16>, vector<4x256xbf16>, vector<128x256xf32> -> vector<128x256xf32>
    %c0_5 = arith.constant 0 : index
    %c0_6 = arith.constant 0 : index
    %7 = vector.load %arg4[%c0_5, %c0_6] : memref<128x1xf32, #tpu.memory_space<vmem>>, vector<128x1xf32>
    %8 = vector.broadcast %7 : vector<128x1xf32> to vector<128x256xf32>
    %9 = arith.addf %6, %8 : vector<128x256xf32>
    %cst_7 = arith.constant 5.000000e-01 : f32
    %10 = vector.broadcast %cst_7 : f32 to vector<128x256xf32>
    %11 = arith.mulf %10, %9 : vector<128x256xf32>
    %12 = math.tanh %11 : vector<128x256xf32>
    %cst_8 = arith.constant 1.000000e+00 : f32
    %13 = vector.broadcast %cst_8 : f32 to vector<128x256xf32>
    %14 = arith.addf %13, %12 : vector<128x256xf32>
    %cst_9 = arith.constant 5.000000e-01 : f32
    %15 = vector.broadcast %cst_9 : f32 to vector<128x256xf32>
    %16 = arith.mulf %15, %14 : vector<128x256xf32>
    %17 = arith.mulf %9, %16 : vector<128x256xf32>
    %cst_10 = arith.constant 9.99999997E-7 : f32
    %18 = vector.broadcast %cst_10 : f32 to vector<128x256xf32>
    %19 = arith.maximumf %17, %18 : vector<128x256xf32>
    %c0_11 = arith.constant 0 : index
    %c0_12 = arith.constant 0 : index
    %20 = vector.load %arg6[%c0_11, %c0_12] : memref<128x256xf32, #tpu.memory_space<vmem>>, vector<128x256xf32>
    %21 = arith.mulf %19, %19 : vector<128x256xf32>
    %22 = arith.mulf %21, %19 : vector<128x256xf32>
    %23 = arith.addf %20, %22 : vector<128x256xf32>
    %c0_13 = arith.constant 0 : index
    %c0_14 = arith.constant 0 : index
    %24 = vector.load %arg6[%c0_13, %c0_14] : memref<128x256xf32, #tpu.memory_space<vmem>>, vector<128x256xf32>
    tpu.vector_store %arg6[%c0_13, %c0_14], %23 {strides = array<i32>} : memref<128x256xf32, #tpu.memory_space<vmem>>, vector<128x256xf32>,
    %c0_i32_15 = arith.constant 0 : i32
    %25 = arith.cmpi eq, %arg1, %c0_i32_15 : i32
    %26 = arith.extui %25 : i1 to i32
    %c0_i32_16 = arith.constant 0 : i32
    %27 = arith.cmpi ne, %26, %c0_i32_16 : i32
    scf.if %27 {
      %c0_17 = arith.constant 0 : index
      %c0_18 = arith.constant 0 : index
      %28 = vector.load %arg6[%c0_17, %c0_18] : memref<128x256xf32, #tpu.memory_space<vmem>>, vector<128x256xf32>
      %cst_19 = arith.constant dense<0.000000e+00> : vector<128xf32>
      %29 = vector.multi_reduction <add>, %28, %cst_19 [1] : vector<128x256xf32> to vector<128xf32>
      %30 = vector.shape_cast %29 : vector<128xf32> to vector<128x1xf32>
      %cst_20 = arith.constant 3.906250e-03 : f32
      %31 = vector.broadcast %cst_20 : f32 to vector<128x1xf32>
      %32 = arith.mulf %30, %31 : vector<128x1xf32>
      %33 = math.log %32 : vector<128x1xf32>
      %cst_21 = arith.constant 0.333333343 : f32
      %34 = vector.broadcast %cst_21 : f32 to vector<128x1xf32>
      %35 = arith.mulf %33, %34 : vector<128x1xf32>
      %36 = math.exp %35 : vector<128x1xf32>
      %c0_22 = arith.constant 0 : index
      %c0_23 = arith.constant 0 : index
      %c0_24 = arith.constant 0 : index
      %37 = vector.load %arg5[%c0_22, %c0_23, %c0_24] : memref<1x128x1xf32, #tpu.memory_space<vmem>>, vector<1x128x1xf32>
      %38 = vector.shape_cast %37 : vector<1x128x1xf32> to vector<128x1xf32>
      %39 = vector.shape_cast %36 : vector<128x1xf32> to vector<1x128x1xf32>
      tpu.vector_store %arg5[%c0_22, %c0_23, %c0_24], %39 {strides = array<i32>} : memref<1x128x1xf32, #tpu.memory_space<vmem>>, vector<1x128x1xf32>,
    } else {
    }
    return
  }
  func.func @transform_0(%arg0: i32, %arg1: i32) -> (i32, i32, i32) {
    %c0_i32 = arith.constant 0 : i32
    %c0_i32_0 = arith.constant 0 : i32
    return %arg0, %c0_i32, %arg1 : i32, i32, i32
  }
  func.func @transform_1(%arg0: i32, %arg1: i32) -> (i32, i32) {
    %c0_i32 = arith.constant 0 : i32
    %c0_i32_0 = arith.constant 0 : i32
    %c0_i32_1 = arith.constant 0 : i32
    return %c0_i32, %c0_i32_0 : i32, i32
  }
  func.func @transform_2(%arg0: i32, %arg1: i32) -> (i32, i32) {
    %c0_i32 = arith.constant 0 : i32
    %c0_i32_0 = arith.constant 0 : i32
    %c0_i32_1 = arith.constant 0 : i32
    return %c0_i32, %c0_i32_0 : i32, i32
  }
  func.func @transform_3(%arg0: i32, %arg1: i32) -> (i32, i32, i32) {
    %c0_i32 = arith.constant 0 : i32
    %c0_i32_0 = arith.constant 0 : i32
    %c0_i32_1 = arith.constant 0 : i32
    return %arg0, %c0_i32, %c0_i32_0 : i32, i32, i32
  }
}

module attributes {stable_mosaic.version = 11 : i64} {
  func.func @head_kernel(%arg0: i32, %arg1: memref<2x128xf32, #tpu.memory_space<vmem>>, %arg2: memref<128x512xf32, #tpu.memory_space<vmem>>, %arg3: memref<1x512xf32, #tpu.memory_space<vmem>>, %arg4: memref<512x128xf32, #tpu.memory_space<vmem>>, %arg5: memref<1x128xf32, #tpu.memory_space<vmem>>, %arg6: memref<2x128xf32, #tpu.memory_space<vmem>>) attributes {dimension_semantics = [#tpu.dimension_semantics<arbitrary>], iteration_bounds = array<i64: 1>, scalar_prefetch = 0 : i64, scratch_operands = 0 : i64, tpu.core_type = #tpu.core_type<tc>, window_params = [{pipeline_mode = #tpu.pipeline_mode<synchronous>, transform_indices = @transform_0, window_bounds = array<i64: 2, 128>}, {pipeline_mode = #tpu.pipeline_mode<synchronous>, transform_indices = @transform_1, window_bounds = array<i64: 128, 512>}, {pipeline_mode = #tpu.pipeline_mode<synchronous>, transform_indices = @transform_2, window_bounds = array<i64: 1, 512>}, {pipeline_mode = #tpu.pipeline_mode<synchronous>, transform_indices = @transform_3, window_bounds = array<i64: 512, 128>}, {pipeline_mode = #tpu.pipeline_mode<synchronous>, transform_indices = @transform_4, window_bounds = array<i64: 1, 128>}, {pipeline_mode = #tpu.pipeline_mode<synchronous>, transform_indices = @transform_5, window_bounds = array<i64: 2, 128>}]} {
    %c0 = arith.constant 0 : index
    %c0_0 = arith.constant 0 : index
    %0 = vector.load %arg1[%c0, %c0_0] : memref<2x128xf32, #tpu.memory_space<vmem>>, vector<2x128xf32>
    %c0_1 = arith.constant 0 : index
    %c0_2 = arith.constant 0 : index
    %1 = vector.load %arg2[%c0_1, %c0_2] : memref<128x512xf32, #tpu.memory_space<vmem>>, vector<128x512xf32>
    %cst = arith.constant dense<0.000000e+00> : vector<2x512xf32>
    %2 = tpu.matmul %0, %1, %cst {dimension_numbers = #tpu.dot_dimension_numbers<[1], [0], [0], [1], [0, 0, 1, 1], [], []>} : vector<2x128xf32>, vector<128x512xf32>, vector<2x512xf32> -> vector<2x512xf32>
    %c0_3 = arith.constant 0 : index
    %c0_4 = arith.constant 0 : index
    %3 = vector.load %arg3[%c0_3, %c0_4] : memref<1x512xf32, #tpu.memory_space<vmem>>, vector<1x512xf32>
    %4 = vector.broadcast %3 : vector<1x512xf32> to vector<2x512xf32>
    %5 = arith.addf %2, %4 : vector<2x512xf32>
    %cst_5 = arith.constant 5.000000e-01 : f32
    %6 = vector.broadcast %cst_5 : f32 to vector<2x512xf32>
    %7 = arith.mulf %6, %5 : vector<2x512xf32>
    %8 = math.tanh %7 : vector<2x512xf32>
    %cst_6 = arith.constant 1.000000e+00 : f32
    %9 = vector.broadcast %cst_6 : f32 to vector<2x512xf32>
    %10 = arith.addf %9, %8 : vector<2x512xf32>
    %cst_7 = arith.constant 5.000000e-01 : f32
    %11 = vector.broadcast %cst_7 : f32 to vector<2x512xf32>
    %12 = arith.mulf %11, %10 : vector<2x512xf32>
    %13 = arith.mulf %5, %12 : vector<2x512xf32>
    %c0_8 = arith.constant 0 : index
    %c0_9 = arith.constant 0 : index
    %14 = vector.load %arg4[%c0_8, %c0_9] : memref<512x128xf32, #tpu.memory_space<vmem>>, vector<512x128xf32>
    %cst_10 = arith.constant dense<0.000000e+00> : vector<2x128xf32>
    %15 = tpu.matmul %13, %14, %cst_10 {dimension_numbers = #tpu.dot_dimension_numbers<[1], [0], [0], [1], [0, 0, 1, 1], [], []>} : vector<2x512xf32>, vector<512x128xf32>, vector<2x128xf32> -> vector<2x128xf32>
    %c0_11 = arith.constant 0 : index
    %c0_12 = arith.constant 0 : index
    %16 = vector.load %arg5[%c0_11, %c0_12] : memref<1x128xf32, #tpu.memory_space<vmem>>, vector<1x128xf32>
    %17 = vector.broadcast %16 : vector<1x128xf32> to vector<2x128xf32>
    %18 = arith.addf %15, %17 : vector<2x128xf32>
    %c0_13 = arith.constant 0 : index
    %c0_14 = arith.constant 0 : index
    %19 = vector.load %arg6[%c0_13, %c0_14] : memref<2x128xf32, #tpu.memory_space<vmem>>, vector<2x128xf32>
    tpu.vector_store %arg6[%c0_13, %c0_14], %18 {strides = array<i32>} : memref<2x128xf32, #tpu.memory_space<vmem>>, vector<2x128xf32>,
    return
  }
  func.func @transform_0(%arg0: i32) -> (i32, i32) {
    %c0_i32 = arith.constant 0 : i32
    %c0_i32_0 = arith.constant 0 : i32
    %c0_i32_1 = arith.constant 0 : i32
    return %c0_i32, %c0_i32_0 : i32, i32
  }
  func.func @transform_1(%arg0: i32) -> (i32, i32) {
    %c0_i32 = arith.constant 0 : i32
    %c0_i32_0 = arith.constant 0 : i32
    %c0_i32_1 = arith.constant 0 : i32
    return %c0_i32, %c0_i32_0 : i32, i32
  }
  func.func @transform_2(%arg0: i32) -> (i32, i32) {
    %c0_i32 = arith.constant 0 : i32
    %c0_i32_0 = arith.constant 0 : i32
    %c0_i32_1 = arith.constant 0 : i32
    return %c0_i32, %c0_i32_0 : i32, i32
  }
  func.func @transform_3(%arg0: i32) -> (i32, i32) {
    %c0_i32 = arith.constant 0 : i32
    %c0_i32_0 = arith.constant 0 : i32
    %c0_i32_1 = arith.constant 0 : i32
    return %c0_i32, %c0_i32_0 : i32, i32
  }
  func.func @transform_4(%arg0: i32) -> (i32, i32) {
    %c0_i32 = arith.constant 0 : i32
    %c0_i32_0 = arith.constant 0 : i32
    %c0_i32_1 = arith.constant 0 : i32
    return %c0_i32, %c0_i32_0 : i32, i32
  }
  func.func @transform_5(%arg0: i32) -> (i32, i32) {
    %c0_i32 = arith.constant 0 : i32
    %c0_i32_0 = arith.constant 0 : i32
    %c0_i32_1 = arith.constant 0 : i32
    return %c0_i32, %c0_i32_0 : i32, i32
  }
}

</mosaic_0001>

<bundles_post_ra>
// kernel: net_classifier_forward.2
= control target key start
LH: loop header
LB: loop body
LE: loop exit
PB: predicated region body
PF: predicated region fallthrough
CT: control target
= control target key end

     0   :  { %s1410_s12 = smov 0   ;;  %s1412_s13 = smov 0   ;;  %s1736_s0 = inlined_call_operand.vmem [shape: bf16[2,4,256], index: 0, kind: input, shape index: {}]   ;;  %s1737_s1 = inlined_call_operand.vmem [shape: bf16[128,4], index: 1, kind: input, shape index: {}]   ;;  %s1738_s2 = inlined_call_operand.vmem [shape: f32[128,1], index: 2, kind: input, shape index: {}]   ;;  %s1739_s3 = inlined_call_operand.vmem [shape: f32[2,128,1], index: 3, kind: output, shape index: {}]  }
   0x1   :  { %s1414_s14 = smov 0  }
   0x2 LB: > { %s25_s15 = sadd.s32 1, %s1383_s13  ;;  %p1142_p0 = scmp.ge.s32.totalorder %s1387_s14, 1  ;;  %s1387_s14 = sphi %s1414_s14, %s13_s14   ;;  %s1383_s13 = sphi %s1412_s13, %s1741_s13   ;;  %s1379_s12 = sphi %s1410_s12, %s1740_s12  }
   0x3   : > { %p27_p1 = scmp.ge.s32.totalorder %s25_s15, 2  ;;  %p156_p2 = scmp.lt.s32.totalorder %s1387_s14, 3 }
   0x5   : > { %s1743_s15 = smov (%p27_p1, %s25_s15), 0  ;;  %p157_p3 = pnand %p1142_p0, %p156_p2 }
   0x6   : > { %p185_p4 = scmp.lt.s32.totalorder (!%p157_p3), %s1379_s12, 1 }
   0x7   : > { %160 = sbr.rel (%p157_p3) target bundleno = 389 (0x185), region = 32 }
   0xc   : > { %v253_v0 = vld [vmem:[%s1738_s2] sm:$0xff]  ;;  %v255_v1 = vld [vmem:[%s1738_s2 + $0x10] sm:$0xff]  ;;  %v1389_v2 = vmov 0   ;;  %s1745_s12 = smov (!%p185_p4, %s1379_s12), 1  ;;  %v254_v5 = vld [vmem:[%s1738_s2 + $0x8] sm:$0xff]  ;;  %vm418_vm0 = vcmask 1041408  }
   0xd   : > { %1234 = vset.pattern.permute.xlu0 %v1389_v2  ;;  %1235 = vset.pattern.permute.xlu1 %v1389_v2  ;;  %v257_v3 = vld [vmem:[%s1738_s2 + $0x20] sm:$0xff]  ;;  %s1197_s22 = sshll.u32 %s1745_s12, 2  ;;  %v256_v6 = vld [vmem:[%s1738_s2 + $0x18] sm:$0xff]  ;;  %v258_v7 = vld [vmem:[%s1738_s2 + $0x28] sm:$0xff]  ;;  %vm393_vm1 = vcmask 31744   ;;  %vm1052_vm2 = vcmask 7168  }
   0xe   : > { %271 = vperm.xlu0 %1234, %v253_v0   ;;  %281 = vperm.xlu1 %1235, %v255_v1   ;;  %s192_s25 = scalar_lea.vmem %s1736_s0, %s1197_s22  ;;  %v259_v8 = vld [vmem:[%s1738_s2 + $0x30] sm:$0xff]  ;;  %v1199_v13 = vld [vmem:[%s1737_s1] sm:$0xff]  ;;  %v260_v15 = vld [vmem:[%s1738_s2 + $0x38] sm:$0xff]  ;;  %s1198_s22 = sshll.u32 %s1745_s12, 7 }
   0xf   : > { %1236 = vset.pattern.permute.xlu2 %v1389_v2  ;;  %v236_v4 = vld [vmem:[%s192_s25] sm:$0xf]  ;;  %v262_v17 = vld [vmem:[%s1738_s2 + $0x48] sm:$0xff]  ;;  %v263_v18 = vld [vmem:[%s1738_s2 + $0x50] sm:$0xff]  ;;  %s1693_s25 = scalar_lea.vmem %s1739_s3, %s1198_s22 }
  0x10   : > { %291 = vperm.xlu2 %1236, %v257_v3   ;;  %390 = vst [vmem:[#allocation1] ss:$4 sm:$0xff] %v236_v4  ;;  %v1203_v14 = vld [vmem:[%s1737_s1 + $0x20] sm:$0xff]  ;;  %v264_v19 = vld [vmem:[%s1738_s2 + $0x58] sm:$0xff]  ;;  %v1200_v21 = vld [vmem:[%s1737_s1 + $0x8] sm:$0xff] }
  0x11   : > { %v261_v16 = vld [vmem:[%s1738_s2 + $0x40] sm:$0xff]  ;;  %v1204_v22 = vld [vmem:[%s1737_s1 + $0x28] sm:$0xff]  ;;  %v267_v24 = vld [vmem:[%s1738_s2 + $0x70] sm:$0xff] }
  0x12   : > { %v265_v20 = vld [vmem:[%s1738_s2 + $0x60] sm:$0xff]  ;;  %v266_v23 = vld [vmem:[%s1738_s2 + $0x68] sm:$0xff]  ;;  %v268_v25 = vld [vmem:[%s1738_s2 + $0x78] sm:$0xff] }
  0x13   : > { %v1201_v26 = vld [vmem:[%s1737_s1 + $0x10] sm:$0xff]  ;;  %v1202_v28 = vld [vmem:[%s1737_s1 + $0x18] sm:$0xff] }
  0x14   : > { %v1205_v27 = vld [vmem:[%s1737_s1 + $0x30] sm:$0xff]  ;;  %v1206_v29 = vld [vmem:[%s1737_s1 + $0x38] sm:$0xff] }
  0x16   : > { %276 = vperm.xlu0 %1234, %v254_v5   ;;  %286 = vperm.xlu1 %1235, %v256_v6  }
  0x17   : > { %v391_v9 = vld.sshfl [vmem:[#allocation1] sm:$0xff pattern:$0x73625140]  ;;  %v392_v10 = vld.sshfl [vmem:[#allocation1 + $0x8] sm:$0xff pattern:$0x73625140] }
  0x18   : > { %296 = vperm.xlu2 %1236, %v258_v7   ;;  %v419_v11 = vsel %vm418_vm0, %v391_v9, 0  ;;  %v421_v12 = vsel %vm418_vm0, %v392_v10, 0 }
  0x19   : > { %430 = vmatpush.bf16.msra.mxu0 %v419_v11  ;;  %1207 = vmatpush.bf16.msra.mxu2 %v419_v11 }
  0x1a   : > { %479 = vmatpush.bf16.msra.mxu1 %v421_v12  ;;  %1208 = vmatpush.bf16.msra.mxu3 %v421_v12 }
  0x1c   : > { %1179 = vmatmul.msk.bf16.vlgmr.msra.gmra.mxu0 %vm393_vm1, %v1199_v13  ;;  %1183 = vmatmul.msk.bf16.vlgmr.msra.gmra.mxu2 %vm393_vm1, %v1203_v14 }
  0x1d   : > { %1187 = vmatmul.msk.bf16.vlgmr.msra.gmra.mxu1 %vm393_vm1, %v1199_v13  ;;  %1191 = vmatmul.msk.bf16.vlgmr.msra.gmra.mxu3 %vm393_vm1, %v1203_v14 }
  0x1e   : > { %301 = vperm.xlu0 %1234, %v259_v8   ;;  %306 = vperm.xlu1 %1235, %v260_v15  }
  0x20   : > { %311 = vperm.xlu2 %1236, %v261_v16  }
  0x26   : > { %316 = vperm.xlu0 %1234, %v262_v17   ;;  %321 = vperm.xlu1 %1235, %v263_v18  }
  0x28   : > { %326 = vperm.xlu2 %1236, %v264_v19  }
  0x2c   : > { %1180 = vmatmul.msk.bf16.gmra.mxu0 %vm393_vm1, %v1200_v21  ;;  %1184 = vmatmul.msk.bf16.gmra.mxu2 %vm393_vm1, %v1204_v22 }
  0x2d   : > { %1188 = vmatmul.msk.bf16.gmra.mxu1 %vm393_vm1, %v1200_v21  ;;  %1192 = vmatmul.msk.bf16.gmra.mxu3 %vm393_vm1, %v1204_v22 }
  0x2e   : > { %331 = vperm.xlu0 %1234, %v265_v20   ;;  %336 = vperm.xlu1 %1235, %v266_v23  }
  0x30   : > { %341 = vperm.xlu2 %1236, %v267_v24  }
  0x36   : > { %346 = vperm.xlu0 %1234, %v268_v25  }
  0x3c   : > { %1181 = vmatmul.msk.bf16.gmra.mxu0 %vm393_vm1, %v1201_v26  ;;  %1185 = vmatmul.msk.bf16.gmra.mxu2 %vm393_vm1, %v1205_v27 }
  0x3d   : > { %1189 = vmatmul.msk.bf16.gmra.mxu1 %vm393_vm1, %v1201_v26  ;;  %1193 = vmatmul.msk.bf16.gmra.mxu3 %vm393_vm1, %v1205_v27 }
  0x4c   : > { %1182 = vmatmul.msk.bf16.gmra.mxu0 %vm393_vm1, %v1202_v28  ;;  %1186 = vmatmul.msk.bf16.gmra.mxu2 %vm393_vm1, %v1206_v29 }
  0x4d   : > { %1190 = vmatmul.msk.bf16.gmra.mxu1 %vm393_vm1, %v1202_v28  ;;  %1194 = vmatmul.msk.bf16.gmra.mxu3 %vm393_vm1, %v1206_v29 }
  0x6a   : > { %v1522_v31 = vpop.permute.xlu2 %291 }
  0x72   : > { %v1524_v34 = vpop.permute.xlu2 %296 }
  0x7a   : > { %v312_v43 = vpop.permute.xlu2 %311 }
  0x80   : > { %v272_v30 = vpop.permute.xlu0 %271  ;;  %v282_v32 = vpop.permute.xlu1 %281 }
  0x88   : > { %v277_v33 = vpop.permute.xlu0 %276  ;;  %v1526_v38 = vpop.permute.xlu1 %286 }
  0x90   : > { %v1528_v41 = vpop.permute.xlu0 %301  ;;  %v1535_v57 = vpop.permute.xlu1 %306 }
  0x98   : > { %v317_v61 = vpop.permute.xlu0 %316  ;;  %v322_v27 = vpop.permute.xlu1 %321 }
  0x99   : > { %v432_v35 = vpop.f32.mrf.mxu0 }
  0x9a   : > { %v433_v36 = vadd.f32 %v432_v35, %v272_v30  ;;  %v481_v37 = vpop.f32.mrf.mxu1 }
  0x9b   : > { %v482_v39 = vadd.f32 %v481_v37, %v272_v30 }
  0x9c   : > { %v521_v40 = vmul.f32 0.5, %v433_v36 }
  0x9d   : > { %v522_v42 = vmul.f32 0.5, %v482_v39 }
  0x9e   : > { %1237 = vtanh.f32 %v521_v40 }
  0x9f   : > { %1239 = vtanh.f32 %v522_v42  ;;  %v452_v44 = vpop.f32.mrf.mxu2 }
  0xa0   : > { %v453_v45 = vadd.f32 %v452_v44, %v312_v43  ;;  %v501_v46 = vpop.f32.mrf.mxu3 }
  0xa1   : > { %v502_v47 = vadd.f32 %v501_v46, %v312_v43  ;;  %v434_v48 = vpop.f32.mrf.mxu0 }
  0xa2   : > { %v537_v49 = vmul.f32 0.5, %v453_v45  ;;  %v1530_v50 = vadd.f32 %v434_v48, %v277_v33  ;;  %v483_v51 = vpop.f32.mrf.mxu1 }
  0xa3   : > { %v538_v52 = vmul.f32 0.5, %v502_v47  ;;  %v1532_v53 = vadd.f32 %v483_v51, %v277_v33 }
  0xa4   : > { %v1238_v54 = vpop.eup %1237  ;;  %1241 = vtanh.f32 %v537_v49  ;;  %v523_v55 = vmul.f32 0.5, %v1530_v50 }
  0xa5   : > { %v1240_v56 = vpop.eup %1239  ;;  %v585_v58 = vadd.f32 1.0, %v1238_v54  ;;  %1243 = vtanh.f32 %v538_v52  ;;  %v524_v59 = vmul.f32 0.5, %v1532_v53 }
  0xa6   : > { %v586_v60 = vadd.f32 1.0, %v1240_v56  ;;  %1245 = vtanh.f32 %v523_v55 }
  0xa7   : > { %v617_v62 = vmul.f32 0.5, %v585_v58  ;;  %1247 = vtanh.f32 %v524_v59  ;;  %v454_v63 = vpop.f32.mrf.mxu2 }
  0xa8   : > { %v618_v0 = vmul.f32 0.5, %v586_v60  ;;  %v1538_v1 = vadd.f32 %v454_v63, %v317_v61  ;;  %v503_v2 = vpop.f32.mrf.mxu3 }
  0xa9   : > { %v649_v3 = vmul.f32 %v617_v62, %v433_v36  ;;  %v1540_v4 = vadd.f32 %v503_v2, %v317_v61  ;;  %v437_v5 = vpop.f32.mrf.mxu0 }
  0xaa   : > { %v1242_v6 = vpop.eup %1241  ;;  %v650_v7 = vmul.f32 %v618_v0, %v482_v39  ;;  %v539_v8 = vmul.f32 0.5, %v1538_v1  ;;  %v1543_v9 = vadd.f32 %v437_v5, %v282_v32  ;;  %v486_v10 = vpop.f32.mrf.mxu1 }
  0xab   : > { %v1244_v11 = vpop.eup %1243  ;;  %v681_v12 = vmax.f32 %v649_v3, 1e-06  ;;  %v601_v13 = vadd.f32 1.0, %v1242_v6  ;;  %v540_v14 = vmul.f32 0.5, %v1540_v4  ;;  %v1546_v15 = vadd.f32 %v486_v10, %v282_v32 }
  0xac   : > { %v1246_v16 = vpop.eup %1245  ;;  %v682_v17 = vmax.f32 %v650_v7, 1e-06  ;;  %v602_v18 = vadd.f32 1.0, %v1244_v11  ;;  %1249 = vtanh.f32 %v539_v8  ;;  %v525_v19 = vmul.f32 0.5, %v1543_v9  ;;  %v327_v8 = vpop.permute.xlu2 %326 }
  0xad   : > { %v1248_v20 = vpop.eup %1247  ;;  %v633_v21 = vmul.f32 0.5, %v601_v13  ;;  %v587_v22 = vadd.f32 1.0, %v1246_v16  ;;  %1251 = vtanh.f32 %v540_v14  ;;  %v745_v23 = vmul.f32 %v681_v12, %v681_v12 }
  0xae   : > { %v634_v24 = vmul.f32 0.5, %v602_v18  ;;  %1253 = vtanh.f32 %v525_v19  ;;  %v746_v25 = vmul.f32 %v682_v17, %v682_v17  ;;  %v588_v28 = vadd.f32 1.0, %v1248_v20 }
  0xaf   : > { %v665_v26 = vmul.f32 %v633_v21, %v453_v45  ;;  %v526_v29 = vmul.f32 0.5, %v1546_v15  ;;  %v457_v30 = vpop.f32.mrf.mxu2  ;;  %v619_v33 = vmul.f32 0.5, %v587_v22  ;;  %v777_v48 = vmul.f32 %v745_v23, %v681_v12 }
  0xb0   : > { %v666_v32 = vmul.f32 %v634_v24, %v502_v47  ;;  %v1550_v35 = vadd.f32 %v457_v30, %v322_v27  ;;  %v506_v36 = vpop.f32.mrf.mxu3  ;;  %v620_v47 = vmul.f32 0.5, %v588_v28  ;;  %v778_v54 = vmul.f32 %v746_v25, %v682_v17 }
  0xb1   : > { %v697_v37 = vmax.f32 %v665_v26, 1e-06  ;;  %1255 = vtanh.f32 %v526_v29  ;;  %v1552_v39 = vadd.f32 %v506_v36, %v322_v27  ;;  %v439_v40 = vpop.f32.mrf.mxu0  ;;  %v651_v56 = vmul.f32 %v619_v33, %v1530_v50 }
  0xb2   : > { %v1250_v42 = vpop.eup %1249  ;;  %v698_v43 = vmax.f32 %v666_v32, 1e-06  ;;  %v541_v44 = vmul.f32 0.5, %v1550_v35  ;;  %v1556_v45 = vadd.f32 %v439_v40, %v1526_v38  ;;  %v488_v46 = vpop.f32.mrf.mxu1  ;;  %v652_v5 = vmul.f32 %v620_v47, %v1532_v53 }
  0xb3   : > { %v1252_v49 = vpop.eup %1251  ;;  %v603_v51 = vadd.f32 1.0, %v1250_v42  ;;  %v542_v52 = vmul.f32 0.5, %v1552_v39  ;;  %v761_v59 = vmul.f32 %v697_v37, %v697_v37  ;;  %v1562_v2 = vadd.f32 %v488_v46, %v1526_v38  ;;  %v332_v40 = vpop.permute.xlu0 %331 }
  0xb4   : > { %v1254_v55 = vpop.eup %1253  ;;  %v604_v58 = vadd.f32 1.0, %v1252_v49  ;;  %1257 = vtanh.f32 %v541_v44  ;;  %v762_v60 = vmul.f32 %v698_v43, %v698_v43  ;;  %v527_v0 = vmul.f32 0.5, %v1556_v45 }
  0xb5   : > { %v635_v61 = vmul.f32 0.5, %v603_v51  ;;  %1259 = vtanh.f32 %v542_v52  ;;  %v589_v63 = vadd.f32 1.0, %v1254_v55  ;;  %v908_v7 = vadd.f32 %v778_v54, %v777_v48 }
  0xb6   : > { %v636_v62 = vmul.f32 0.5, %v604_v58  ;;  %1261 = vtanh.f32 %v527_v0  ;;  %v528_v12 = vmul.f32 0.5, %v1562_v2  ;;  %v1568_v14 = vmax.f32 %v651_v56, 1e-06 }
  0xb7   : > { %v1256_v3 = vpop.eup %1255  ;;  %v667_v6 = vmul.f32 %v635_v61, %v1538_v1  ;;  %v459_v50 = vpop.f32.mrf.mxu2  ;;  %909 = vadd.xlane.f32.xlu1 %v908_v7  ;;  %v621_v1 = vmul.f32 0.5, %v589_v63  ;;  %v793_v19 = vmul.f32 %v761_v59, %v697_v37  ;;  %v794_v20 = vmul.f32 %v762_v60, %v698_v43 }
  0xb8   : > { %v668_v10 = vmul.f32 %v636_v62, %v1540_v4  ;;  %v590_v11 = vadd.f32 1.0, %v1256_v3  ;;  %v508_v13 = vpop.f32.mrf.mxu3  ;;  %v1570_v38 = vadd.f32 %v459_v50, %v327_v8  ;;  %1263 = vtanh.f32 %v528_v12 }
  0xb9   : > { %v1572_v16 = vadd.f32 %v508_v13, %v327_v8  ;;  %v442_v53 = vpop.f32.mrf.mxu0  ;;  %v1574_v21 = vmax.f32 %v652_v5, 1e-06  ;;  %v699_v25 = vmax.f32 %v667_v6, 1e-06  ;;  %v747_v33 = vmul.f32 %v1568_v14, %v1568_v14 }
  0xba   : > { %v1258_v17 = vpop.eup %1257  ;;  %v491_v18 = vpop.f32.mrf.mxu1  ;;  %v622_v22 = vmul.f32 0.5, %v590_v11  ;;  %v543_v24 = vmul.f32 0.5, %v1570_v38  ;;  %v700_v26 = vmax.f32 %v668_v10, 1e-06  ;;  %v653_v36 = vmul.f32 %v621_v1, %v1543_v9 }
  0xbb   : > { %v1260_v4 = vpop.eup %1259  ;;  %v605_v23 = vadd.f32 1.0, %v1258_v17  ;;  %v544_v27 = vmul.f32 0.5, %v1572_v16  ;;  %v1579_v30 = vadd.f32 %v491_v18, %v1522_v31  ;;  %v932_v37 = vadd.f32 %v794_v20, %v793_v19 }
  0xbc   : > { %v606_v29 = vadd.f32 1.0, %v1260_v4  ;;  %1265 = vtanh.f32 %v543_v24  ;;  %v1262_v32 = vpop.eup %1261  ;;  %v654_v42 = vmul.f32 %v622_v22, %v1546_v15  ;;  %v1587_v46 = vadd.f32 %v442_v53, %v1522_v31 }
  0xbd   : > { %v637_v28 = vmul.f32 0.5, %v605_v23  ;;  %1267 = vtanh.f32 %v544_v27  ;;  %v591_v43 = vadd.f32 1.0, %v1262_v32  ;;  %v530_v44 = vmul.f32 0.5, %v1579_v30  ;;  %933 = vadd.xlane.f32.xlu2 %v932_v37 }
  0xbe   : > { %v1264_v49 = vpop.eup %1263  ;;  %v748_v47 = vmul.f32 %v1574_v21, %v1574_v21  ;;  %v763_v51 = vmul.f32 %v699_v25, %v699_v25  ;;  %v764_v52 = vmul.f32 %v700_v26, %v700_v26  ;;  %v638_v15 = vmul.f32 0.5, %v606_v29 }
  0xbf   : > { %v462_v48 = vpop.f32.mrf.mxu2  ;;  %v669_v55 = vmul.f32 %v637_v28, %v1550_v35  ;;  %v592_v56 = vadd.f32 1.0, %v1264_v49  ;;  %1269 = vtanh.f32 %v530_v44  ;;  %v623_v59 = vmul.f32 0.5, %v591_v43 }
  0xc0   : > { %v1591_v9 = vadd.f32 %v462_v48, %v332_v40  ;;  %v511_v54 = vpop.f32.mrf.mxu3  ;;  %v529_v31 = vmul.f32 0.5, %v1587_v46  ;;  %v1598_v0 = vmax.f32 %v653_v36, 1e-06  ;;  %v1600_v3 = vmax.f32 %v654_v42, 1e-06 }
  0xc1   : > { %v444_v58 = vpop.f32.mrf.mxu0  ;;  %v1596_v61 = vadd.f32 %v511_v54, %v332_v40  ;;  %v624_v5 = vmul.f32 0.5, %v592_v56  ;;  %v795_v8 = vmul.f32 %v763_v51, %v699_v25  ;;  %v1606_v10 = vmax.f32 %v669_v55, 1e-06  ;;  %v337_v25 = vpop.permute.xlu1 %336 }
  0xc2   : > { %v545_v60 = vmul.f32 0.5, %v1591_v9  ;;  %v493_v62 = vpop.f32.mrf.mxu1  ;;  %v1266_v63 = vpop.eup %1265  ;;  %1271 = vtanh.f32 %v529_v31  ;;  %v670_v11 = vmul.f32 %v638_v15, %v1552_v39  ;;  %v655_v13 = vmul.f32 %v623_v59, %v1556_v45 }
  0xc3   : > { %v1603_v35 = vadd.f32 %v493_v62, %v1524_v34  ;;  %v1268_v6 = vpop.eup %1267  ;;  %v607_v7 = vadd.f32 1.0, %v1266_v63  ;;  %v546_v50 = vmul.f32 0.5, %v1596_v61  ;;  %v796_v17 = vmul.f32 %v764_v52, %v700_v26 }
  0xc4   : > { %v608_v12 = vadd.f32 1.0, %v1268_v6  ;;  %1273 = vtanh.f32 %v545_v60  ;;  %v749_v18 = vmul.f32 %v1598_v0, %v1598_v0  ;;  %v1615_v19 = vmul.f32 %v1600_v3, %v1600_v3 }
  0xc5   : > { %1275 = vtanh.f32 %v546_v50  ;;  %v532_v53 = vmul.f32 0.5, %v1603_v35  ;;  %v1270_v1 = vpop.eup %1269  ;;  %v656_v20 = vmul.f32 %v624_v5, %v1562_v2  ;;  %v1619_v39 = vadd.f32 %v444_v58, %v1524_v34 }
  0xc6   : > { %v639_v22 = vmul.f32 0.5, %v607_v7  ;;  %v594_v45 = vadd.f32 1.0, %v1270_v1  ;;  %v935_v23 = vadd.f32 %v796_v17, %v795_v8  ;;  %v702_v26 = vmax.f32 %v670_v11, 1e-06 }
  0xc7   : > { %v464_v4 = vpop.f32.mrf.mxu2  ;;  %1277 = vtanh.f32 %v532_v53  ;;  %v640_v27 = vmul.f32 0.5, %v608_v12  ;;  %v531_v28 = vmul.f32 0.5, %v1619_v39  ;;  %v779_v29 = vmul.f32 %v747_v33, %v1568_v14 }
  0xc8   : > { %v513_v24 = vpop.f32.mrf.mxu3  ;;  %v1272_v32 = vpop.eup %1271  ;;  %v765_v2 = vmul.f32 %v1606_v10, %v1606_v10  ;;  %v687_v36 = vmax.f32 %v655_v13, 1e-06  ;;  %936 = vadd.xlane.f32.xlu0 %v935_v23  ;;  %v780_v34 = vmul.f32 %v748_v47, %v1574_v21  ;;  %v1626_v37 = vadd.f32 %v464_v4, %v337_v25 }
  0xc9   : > { %v626_v42 = vmul.f32 0.5, %v594_v45  ;;  %v593_v43 = vadd.f32 1.0, %v1272_v32  ;;  %1279 = vtanh.f32 %v531_v28  ;;  %v1628_v44 = vadd.f32 %v513_v24, %v337_v25  ;;  %v447_v48 = vpop.f32.mrf.mxu0 }
  0xca   : > { %v1274_v40 = vpop.eup %1273  ;;  %v688_v51 = vmax.f32 %v656_v20, 1e-06  ;;  %v671_v14 = vmul.f32 %v639_v22, %v1570_v38  ;;  %v911_v52 = vadd.f32 %v780_v34, %v779_v29  ;;  %v672_v54 = vmul.f32 %v640_v27, %v1572_v16  ;;  %v496_v60 = vpop.f32.mrf.mxu1 }
  0xcb   : > { %v1276_v49 = vpop.eup %1275  ;;  %v609_v33 = vadd.f32 1.0, %v1274_v40  ;;  %v625_v55 = vmul.f32 0.5, %v593_v43  ;;  %v547_v21 = vmul.f32 0.5, %v1626_v37  ;;  %v766_v56 = vmul.f32 %v702_v26, %v702_v26  ;;  %v342_v34 = vpop.permute.xlu2 %341 }
  0xcc   : > { %v610_v15 = vadd.f32 1.0, %v1276_v49  ;;  %v751_v58 = vmul.f32 %v687_v36, %v687_v36  ;;  %912 = vadd.xlane.f32.xlu2 %v911_v52  ;;  %v1634_v31 = vadd.f32 %v447_v48, %v1528_v41  ;;  %v658_v62 = vmul.f32 %v626_v42, %v1579_v30 }
  0xcd   : > { %v1278_v47 = vpop.eup %1277  ;;  %v641_v59 = vmul.f32 0.5, %v609_v33  ;;  %v548_v5 = vmul.f32 0.5, %v1628_v44  ;;  %v752_v16 = vmul.f32 %v688_v51, %v688_v51  ;;  %v1638_v6 = vmax.f32 %v671_v14, 1e-06 }
  0xce   : > { %v642_v38 = vmul.f32 0.5, %v610_v15  ;;  %v596_v63 = vadd.f32 1.0, %v1278_v47  ;;  %v657_v7 = vmul.f32 %v625_v55, %v1587_v46  ;;  %v533_v50 = vmul.f32 0.5, %v1634_v31 }
  0xcf   : > { %v1280_v8 = vpop.eup %1279  ;;  %v1642_v11 = vmax.f32 %v672_v54, 1e-06  ;;  %1281 = vtanh.f32 %v547_v21  ;;  %v1645_v13 = vadd.f32 %v496_v60, %v1528_v41  ;;  %v673_v30 = vmul.f32 %v641_v59, %v1591_v9  ;;  %v467_v4 = vpop.f32.mrf.mxu2 }
  0xd0   : > { %v628_v12 = vmul.f32 0.5, %v596_v63  ;;  %v595_v53 = vadd.f32 1.0, %v1280_v8  ;;  %1283 = vtanh.f32 %v533_v50  ;;  %v781_v17 = vmul.f32 %v749_v18, %v1598_v0  ;;  %v516_v9 = vpop.f32.mrf.mxu3 }
  0xd1   : > { %v1649_v1 = vmax.f32 %v658_v62, 1e-06  ;;  %v674_v46 = vmul.f32 %v642_v38, %v1596_v61  ;;  %1285 = vtanh.f32 %v548_v5  ;;  %v534_v20 = vmul.f32 0.5, %v1645_v13  ;;  %v449_v29 = vpop.f32.mrf.mxu0 }
  0xd2   : > { %v689_v22 = vmax.f32 %v657_v7, 1e-06  ;;  %v627_v45 = vmul.f32 0.5, %v595_v53  ;;  %v782_v41 = vmul.f32 %v1615_v19, %v1600_v3  ;;  %v797_v23 = vmul.f32 %v765_v2, %v1606_v10 }
  0xd3   : > { %v767_v24 = vmul.f32 %v1638_v6, %v1638_v6  ;;  %v660_v0 = vmul.f32 %v628_v12, %v1603_v35  ;;  %1287 = vtanh.f32 %v534_v20  ;;  %v798_v18 = vmul.f32 %v766_v56, %v702_v26 }
  0xd4   : > { %v705_v61 = vmax.f32 %v673_v30, 1e-06  ;;  %v659_v25 = vmul.f32 %v627_v45, %v1619_v39  ;;  %v914_v27 = vadd.f32 %v782_v41, %v781_v17  ;;  %v783_v28 = vmul.f32 %v751_v58, %v687_v36  ;;  %v498_v36 = vpop.f32.mrf.mxu1 }
  0xd5   : > { %v1282_v32 = vpop.eup %1281  ;;  %v768_v3 = vmul.f32 %v1642_v11, %v1642_v11  ;;  %v706_v10 = vmax.f32 %v674_v46, 1e-06  ;;  %v938_v19 = vadd.f32 %v798_v18, %v797_v23  ;;  %v784_v2 = vmul.f32 %v752_v16, %v688_v51 }
  0xd6   : > { %v1284_v40 = vpop.eup %1283  ;;  %v754_v35 = vmul.f32 %v1649_v1, %v1649_v1  ;;  %v753_v42 = vmul.f32 %v689_v22, %v689_v22  ;;  %915 = vadd.xlane.f32.xlu0 %v914_v27  ;;  %v1664_v26 = vadd.f32 %v467_v4, %v342_v34  ;;  %v1666_v39 = vadd.f32 %v516_v9, %v342_v34 }
  0xd7   : > { %v1286_v43 = vpop.eup %1285  ;;  %v692_v48 = vmax.f32 %v660_v0, 1e-06  ;;  %v597_v49 = vadd.f32 1.0, %v1284_v40  ;;  %939 = vadd.xlane.f32.xlu1 %v938_v19  ;;  %v917_v14 = vadd.f32 %v784_v2, %v783_v28  ;;  %v1669_v33 = vadd.f32 %v449_v29, %v1535_v57  ;;  %v469_v16 = vpop.f32.mrf.mxu2 }
  0xd8   : > { %v769_v51 = vmul.f32 %v705_v61, %v705_v61  ;;  %v691_v52 = vmax.f32 %v659_v25, 1e-06  ;;  %v549_v54 = vmul.f32 0.5, %v1664_v26  ;;  %v550_v55 = vmul.f32 0.5, %v1666_v39  ;;  %v518_v12 = vpop.f32.mrf.mxu3 }
  0xd9   : > { %v1288_v15 = vpop.eup %1287  ;;  %v770_v21 = vmul.f32 %v706_v10, %v706_v10  ;;  %v629_v47 = vmul.f32 0.5, %v597_v49  ;;  %918 = vadd.xlane.f32.xlu2 %v917_v14  ;;  %v535_v56 = vmul.f32 0.5, %v1669_v33  ;;  %v1675_v58 = vadd.f32 %v498_v36, %v1535_v57  ;;  %v347_v57 = vpop.permute.xlu0 %346 }
  0xda   : > { %v611_v59 = vadd.f32 1.0, %v1282_v32  ;;  %v598_v60 = vadd.f32 1.0, %v1288_v15  ;;  %1289 = vtanh.f32 %v549_v54  ;;  %v799_v62 = vmul.f32 %v767_v24, %v1638_v6 }
  0xdb   : > { %v756_v38 = vmul.f32 %v692_v48, %v692_v48  ;;  %v661_v63 = vmul.f32 %v629_v47, %v1634_v31  ;;  %1291 = vtanh.f32 %v550_v55  ;;  %v536_v5 = vmul.f32 0.5, %v1675_v58 }
  0xdc   : > { %v755_v7 = vmul.f32 %v691_v52, %v691_v52  ;;  %v630_v50 = vmul.f32 0.5, %v598_v60  ;;  %1293 = vtanh.f32 %v535_v56  ;;  %v800_v8 = vmul.f32 %v768_v3, %v1642_v11 }
  0xdd   : > { %v612_v30 = vadd.f32 1.0, %v1286_v43  ;;  %v693_v53 = vmax.f32 %v661_v63, 1e-06  ;;  %1295 = vtanh.f32 %v536_v5  ;;  %v785_v17 = vmul.f32 %v753_v42, %v689_v22 }
  0xde   : > { %v662_v6 = vmul.f32 %v630_v50, %v1645_v13  ;;  %v941_v46 = vadd.f32 %v800_v8, %v799_v62  ;;  %v786_v31 = vmul.f32 %v754_v35, %v1649_v1  ;;  %v470_v20 = vadd.f32 %v469_v16, %v347_v57 }
  0xdf   : > { %v757_v4 = vmul.f32 %v693_v53, %v693_v53  ;;  %v519_v45 = vadd.f32 %v518_v12, %v347_v57  ;;  %v801_v41 = vmul.f32 %v769_v51, %v705_v61  ;;  %v802_v23 = vmul.f32 %v770_v21, %v706_v10 }
  0xe0   : > { %v1290_v9 = vpop.eup %1289  ;;  %v694_v24 = vmax.f32 %v662_v6, 1e-06  ;;  %v920_v0 = vadd.f32 %v786_v31, %v785_v17  ;;  %v551_v11 = vmul.f32 0.5, %v470_v20  ;;  %v787_v18 = vmul.f32 %v755_v7, %v691_v52 }
  0xe1   : > { %v1292_v25 = vpop.eup %1291  ;;  %v613_v27 = vadd.f32 1.0, %v1290_v9  ;;  %942 = vadd.xlane.f32.xlu2 %v941_v46  ;;  %v552_v28 = vmul.f32 0.5, %v519_v45  ;;  %v944_v22 = vadd.f32 %v802_v23, %v801_v41  ;;  %v788_v29 = vmul.f32 %v756_v38, %v692_v48 }
  0xe2   : > { %v1294_v13 = vpop.eup %1293  ;;  %v643_v32 = vmul.f32 0.5, %v611_v59  ;;  %v758_v34 = vmul.f32 %v694_v24, %v694_v24  ;;  %v614_v1 = vadd.f32 1.0, %v1292_v25  ;;  %921 = vadd.xlane.f32.xlu1 %v920_v0  ;;  %1297 = vtanh.f32 %v551_v11 }
  0xe3   : > { %v1296_v3 = vpop.eup %1295  ;;  %v645_v61 = vmul.f32 0.5, %v613_v27  ;;  %v599_v10 = vadd.f32 1.0, %v1294_v13  ;;  %1299 = vtanh.f32 %v552_v28  ;;  %945 = vadd.xlane.f32.xlu0 %v944_v22  ;;  %v789_v19 = vmul.f32 %v757_v4, %v693_v53 }
  0xe4   : > { %v644_v2 = vmul.f32 0.5, %v612_v30  ;;  %v646_v40 = vmul.f32 0.5, %v614_v1  ;;  %v600_v35 = vadd.f32 1.0, %v1296_v3  ;;  %v790_v42 = vmul.f32 %v758_v34, %v694_v24 }
  0xe5   : > { %v677_v36 = vmul.f32 %v645_v61, %v1664_v26  ;;  %v631_v43 = vmul.f32 0.5, %v599_v10  ;;  %v923_v48 = vadd.f32 %v788_v29, %v787_v18  ;;  %v675_v51 = vmul.f32 %v643_v32, %v1626_v37 }
  0xe6   : > { %v678_v49 = vmul.f32 %v646_v40, %v1666_v39  ;;  %v632_v14 = vmul.f32 0.5, %v600_v35  ;;  %v926_v55 = vadd.f32 %v790_v42, %v789_v19  ;;  %v676_v21 = vmul.f32 %v644_v2, %v1628_v44 }
  0xe7   : > { %v709_v52 = vmax.f32 %v677_v36, 1e-06  ;;  %v663_v54 = vmul.f32 %v631_v43, %v1669_v33  ;;  %v707_v5 = vmax.f32 %v675_v51, 1e-06 }
  0xe8   : > { %v1298_v15 = vpop.eup %1297  ;;  %v710_v47 = vmax.f32 %v678_v49, 1e-06  ;;  %v664_v56 = vmul.f32 %v632_v14, %v1675_v58  ;;  %v708_v7 = vmax.f32 %v676_v21, 1e-06 }
  0xe9   : > { %v1300_v59 = vpop.eup %1299  ;;  %v773_v60 = vmul.f32 %v709_v52, %v709_v52  ;;  %v695_v26 = vmax.f32 %v663_v54, 1e-06  ;;  %v615_v62 = vadd.f32 1.0, %v1298_v15  ;;  %924 = vadd.xlane.f32.xlu2 %v923_v48  ;;  %v771_v6 = vmul.f32 %v707_v5, %v707_v5 }
  0xea   : > { %v774_v38 = vmul.f32 %v710_v47, %v710_v47  ;;  %v696_v39 = vmax.f32 %v664_v56, 1e-06  ;;  %v616_v63 = vadd.f32 1.0, %v1300_v59  ;;  %v772_v46 = vmul.f32 %v708_v7, %v708_v7 }
  0xeb   : > { %v759_v37 = vmul.f32 %v695_v26, %v695_v26  ;;  %v647_v16 = vmul.f32 0.5, %v615_v62  ;;  %927 = vadd.xlane.f32.xlu0 %v926_v55  ;;  %v805_v33 = vmul.f32 %v773_v60, %v709_v52  ;;  %v803_v0 = vmul.f32 %v771_v6, %v707_v5 }
  0xec   : > { %v760_v50 = vmul.f32 %v696_v39, %v696_v39  ;;  %v648_v8 = vmul.f32 0.5, %v616_v63  ;;  %v806_v44 = vmul.f32 %v774_v38, %v710_v47  ;;  %v804_v11 = vmul.f32 %v772_v46, %v708_v7 }
  0xed   : > { %v679_v12 = vmul.f32 %v647_v16, %v470_v20  ;;  %v791_v57 = vmul.f32 %v759_v37, %v695_v26 }
  0xee   : > { %v680_v58 = vmul.f32 %v648_v8, %v519_v45  ;;  %v950_v30 = vadd.f32 %v806_v44, %v805_v33  ;;  %v792_v53 = vmul.f32 %v760_v50, %v696_v39  ;;  %v947_v20 = vadd.f32 %v804_v11, %v803_v0 }
  0xef   : > { %v711_v17 = vmax.f32 %v679_v12, 1e-06 }
  0xf0   : > { %v712_v31 = vmax.f32 %v680_v58, 1e-06  ;;  %v929_v4 = vadd.f32 %v792_v53, %v791_v57 }
  0xf1   : > { %v775_v41 = vmul.f32 %v711_v17, %v711_v17  ;;  %951 = vadd.xlane.f32.xlu2 %v950_v30 }
  0xf2   : > { %v776_v23 = vmul.f32 %v712_v31, %v712_v31  ;;  %930 = vadd.xlane.f32.xlu1 %v929_v4 }
  0xf3   : > { %v807_v9 = vmul.f32 %v775_v41, %v711_v17 }
  0xf4   : > { %v808_v24 = vmul.f32 %v776_v23, %v712_v31 }
  0xf6   : > { %v953_v18 = vadd.f32 %v808_v24, %v807_v9 }
  0xf8   : > { %954 = vadd.xlane.f32.xlu0 %v953_v18 }
  0xfa   : > { %948 = vadd.xlane.f32.xlu1 %v947_v20 }
 0x12a   : > { %v910_v45 = vpop.xlane.xlu1 %909 }
 0x12b   : > { %v956_v25 = vmul.f32 0.00390625, %v910_v45 }
 0x12d   : > { %1301 = vlog2.f32 %v956_v25 }
 0x130   : > { %v934_v27 = vpop.xlane.xlu2 %933 }
 0x131   : > { %v964_v28 = vmul.f32 0.00390625, %v934_v27 }
 0x133   : > { %v1302_v22 = vpop.eup %1301  ;;  %1303 = vlog2.f32 %v964_v28 }
 0x134   : > { %v973_v29 = vmul.f32 0.6931472, %v1302_v22 }
 0x136   : > { %v1004_v13 = vmul.f32 0.33333334, %v973_v29 }
 0x138   : > { %v1020_v32 = vmul.f32 1.442695, %v1004_v13 }
 0x139   : > { %v1304_v34 = vpop.eup %1303 }
 0x13a   : > { %1305 = vpow2.f32 %v1020_v32  ;;  %v989_v1 = vmul.f32 0.6931472, %v1304_v34 }
 0x13b   : > { %v937_v3 = vpop.xlane.xlu0 %936 }
 0x13c   : > { %v965_v61 = vmul.f32 0.00390625, %v937_v3  ;;  %v1012_v10 = vmul.f32 0.33333334, %v989_v1 }
 0x13e   : > { %1307 = vlog2.f32 %v965_v61  ;;  %v1036_v19 = vmul.f32 1.442695, %v1012_v10 }
 0x13f   : > { %v913_v2 = vpop.xlane.xlu2 %912 }
 0x140   : > { %v1306_v40 = vpop.eup %1305  ;;  %v957_v35 = vmul.f32 0.00390625, %v913_v2  ;;  %1309 = vpow2.f32 %v1036_v19 }
 0x141   : > { %1053 = vst.msk [vmem:[%s1693_s25] sm:$0xff] %vm1052_vm2, %v1306_v40 }
 0x142   : > { %1311 = vlog2.f32 %v957_v35 }
 0x144   : > { %v1308_v42 = vpop.eup %1307 }
 0x145   : > { %v991_v36 = vmul.f32 0.6931472, %v1308_v42 }
 0x146   : > { %v1310_v43 = vpop.eup %1309 }
 0x147   : > { %v1013_v48 = vmul.f32 0.33333334, %v991_v36  ;;  %1061 = vst.msk [vmem:[%s1693_s25 + $0x40] sm:$0xff] %vm1052_vm2, %v1310_v43 }
 0x148   : > { %v1312_v49 = vpop.eup %1311 }
 0x149   : > { %v1038_v14 = vmul.f32 1.442695, %v1013_v48  ;;  %v975_v51 = vmul.f32 0.6931472, %v1312_v49  ;;  %v916_v52 = vpop.xlane.xlu0 %915 }
 0x14a   : > { %v958_v54 = vmul.f32 0.00390625, %v916_v52  ;;  %v940_v55 = vpop.xlane.xlu1 %939 }
 0x14b   : > { %1313 = vpow2.f32 %v1038_v14  ;;  %v1005_v15 = vmul.f32 0.33333334, %v975_v51  ;;  %v966_v21 = vmul.f32 0.00390625, %v940_v55 }
 0x14c   : > { %1315 = vlog2.f32 %v958_v54  ;;  %v919_v47 = vpop.xlane.xlu2 %918 }
 0x14d   : > { %v1022_v56 = vmul.f32 1.442695, %v1005_v15  ;;  %1317 = vlog2.f32 %v966_v21  ;;  %v959_v59 = vmul.f32 0.00390625, %v919_v47 }
 0x14f   : > { %1319 = vpow2.f32 %v1022_v56 }
 0x150   : > { %1321 = vlog2.f32 %v959_v59 }
 0x151   : > { %v1314_v60 = vpop.eup %1313 }
 0x152   : > { %v1316_v26 = vpop.eup %1315  ;;  %1062 = vst.msk [vmem:[%s1693_s25 + $0x48] sm:$0xff] %vm1052_vm2, %v1314_v60 }
 0x153   : > { %v1318_v62 = vpop.eup %1317  ;;  %v977_v38 = vmul.f32 0.6931472, %v1316_v26 }
 0x154   : > { %v993_v39 = vmul.f32 0.6931472, %v1318_v62  ;;  %v943_v63 = vpop.xlane.xlu2 %942 }
 0x155   : > { %v1320_v5 = vpop.eup %1319  ;;  %v1006_v37 = vmul.f32 0.33333334, %v977_v38  ;;  %v967_v16 = vmul.f32 0.00390625, %v943_v63  ;;  %v922_v33 = vpop.xlane.xlu1 %921 }
 0x156   : > { %v1322_v7 = vpop.eup %1321  ;;  %1054 = vst.msk [vmem:[%s1693_s25 + $0x8] sm:$0xff] %vm1052_vm2, %v1320_v5  ;;  %v1014_v50 = vmul.f32 0.33333334, %v993_v39  ;;  %v960_v8 = vmul.f32 0.00390625, %v922_v33  ;;  %v946_v44 = vpop.xlane.xlu0 %945 }
 0x157   : > { %v1024_v12 = vmul.f32 1.442695, %v1006_v37  ;;  %v979_v57 = vmul.f32 0.6931472, %v1322_v7  ;;  %1323 = vlog2.f32 %v967_v16  ;;  %v968_v58 = vmul.f32 0.00390625, %v946_v44 }
 0x158   : > { %v1040_v30 = vmul.f32 1.442695, %v1014_v50  ;;  %1325 = vlog2.f32 %v960_v8 }
 0x159   : > { %1327 = vpow2.f32 %v1024_v12  ;;  %v1007_v53 = vmul.f32 0.33333334, %v979_v57 }
 0x15a   : > { %1329 = vpow2.f32 %v1040_v30 }
 0x15b   : > { %v1026_v17 = vmul.f32 1.442695, %v1007_v53  ;;  %1331 = vlog2.f32 %v968_v58 }
 0x15c   : > { %v925_v6 = vpop.xlane.xlu2 %924 }
 0x15d   : > { %v1324_v46 = vpop.eup %1323  ;;  %1333 = vpow2.f32 %v1026_v17  ;;  %v961_v31 = vmul.f32 0.00390625, %v925_v6 }
 0x15e   : > { %v1326_v4 = vpop.eup %1325  ;;  %v995_v41 = vmul.f32 0.6931472, %v1324_v46  ;;  %v928_v23 = vpop.xlane.xlu0 %927 }
 0x15f   : > { %v1328_v9 = vpop.eup %1327  ;;  %v981_v24 = vmul.f32 0.6931472, %v1326_v4  ;;  %1335 = vlog2.f32 %v961_v31  ;;  %v962_v0 = vmul.f32 0.00390625, %v928_v23 }
 0x160   : > { %v1330_v11 = vpop.eup %1329  ;;  %1055 = vst.msk [vmem:[%s1693_s25 + $0x10] sm:$0xff] %vm1052_vm2, %v1328_v9  ;;  %v1015_v18 = vmul.f32 0.33333334, %v995_v41 }
 0x161   : > { %v1332_v20 = vpop.eup %1331  ;;  %1063 = vst.msk [vmem:[%s1693_s25 + $0x50] sm:$0xff] %vm1052_vm2, %v1330_v11  ;;  %v1008_v45 = vmul.f32 0.33333334, %v981_v24  ;;  %1337 = vlog2.f32 %v962_v0 }
 0x162   : > { %v1042_v25 = vmul.f32 1.442695, %v1015_v18  ;;  %v997_v27 = vmul.f32 0.6931472, %v1332_v20 }
 0x163   : > { %v1334_v28 = vpop.eup %1333  ;;  %v1028_v22 = vmul.f32 1.442695, %v1008_v45 }
 0x164   : > { %1056 = vst.msk [vmem:[%s1693_s25 + $0x18] sm:$0xff] %vm1052_vm2, %v1334_v28  ;;  %1339 = vpow2.f32 %v1042_v25  ;;  %v1016_v29 = vmul.f32 0.33333334, %v997_v27  ;;  %v952_v13 = vpop.xlane.xlu2 %951 }
 0x165   : > { %v1336_v32 = vpop.eup %1335  ;;  %1341 = vpow2.f32 %v1028_v22  ;;  %v970_v34 = vmul.f32 0.00390625, %v952_v13  ;;  %v931_v1 = vpop.xlane.xlu1 %930 }
 0x166   : > { %v1044_v3 = vmul.f32 1.442695, %v1016_v29  ;;  %v983_v61 = vmul.f32 0.6931472, %v1336_v32  ;;  %v963_v10 = vmul.f32 0.00390625, %v931_v1 }
 0x167   : > { %v1338_v19 = vpop.eup %1337  ;;  %1343 = vlog2.f32 %v970_v34 }
 0x168   : > { %1345 = vpow2.f32 %v1044_v3  ;;  %v1009_v2 = vmul.f32 0.33333334, %v983_v61  ;;  %v985_v40 = vmul.f32 0.6931472, %v1338_v19 }
 0x169   : > { %1347 = vlog2.f32 %v963_v10 }
 0x16a   : > { %v1340_v35 = vpop.eup %1339  ;;  %v1030_v42 = vmul.f32 1.442695, %v1009_v2  ;;  %v1010_v36 = vmul.f32 0.33333334, %v985_v40 }
 0x16b   : > { %v1342_v43 = vpop.eup %1341  ;;  %1064 = vst.msk [vmem:[%s1693_s25 + $0x58] sm:$0xff] %vm1052_vm2, %v1340_v35  ;;  %v955_v48 = vpop.xlane.xlu0 %954 }
 0x16c   : > { %1057 = vst.msk [vmem:[%s1693_s25 + $0x20] sm:$0xff] %vm1052_vm2, %v1342_v43  ;;  %1349 = vpow2.f32 %v1030_v42  ;;  %v1032_v49 = vmul.f32 1.442695, %v1010_v36  ;;  %v971_v14 = vmul.f32 0.00390625, %v955_v48 }
 0x16d   : > { %v1344_v51 = vpop.eup %1343  ;;  %v949_v52 = vpop.xlane.xlu1 %948 }
 0x16e   : > { %v1346_v54 = vpop.eup %1345  ;;  %1351 = vpow2.f32 %v1032_v49  ;;  %v1001_v55 = vmul.f32 0.6931472, %v1344_v51  ;;  %v969_v15 = vmul.f32 0.00390625, %v949_v52 }
 0x16f   : > { %v1348_v21 = vpop.eup %1347  ;;  %1065 = vst.msk [vmem:[%s1693_s25 + $0x60] sm:$0xff] %vm1052_vm2, %v1346_v54  ;;  %1353 = vlog2.f32 %v971_v14 }
 0x170   : > { %v1018_v47 = vmul.f32 0.33333334, %v1001_v55  ;;  %v987_v56 = vmul.f32 0.6931472, %v1348_v21  ;;  %1355 = vlog2.f32 %v969_v15 }
 0x172   : > { %v1350_v59 = vpop.eup %1349  ;;  %v1048_v60 = vmul.f32 1.442695, %v1018_v47  ;;  %v1011_v26 = vmul.f32 0.33333334, %v987_v56 }
 0x173   : > { %1058 = vst.msk [vmem:[%s1693_s25 + $0x28] sm:$0xff] %vm1052_vm2, %v1350_v59 }
 0x174   : > { %v1352_v62 = vpop.eup %1351  ;;  %1357 = vpow2.f32 %v1048_v60  ;;  %v1034_v38 = vmul.f32 1.442695, %v1011_v26 }
 0x175   : > { %v1354_v39 = vpop.eup %1353  ;;  %1059 = vst.msk [vmem:[%s1693_s25 + $0x30] sm:$0xff] %vm1052_vm2, %v1352_v62 }
 0x176   : > { %v1356_v63 = vpop.eup %1355  ;;  %1359 = vpow2.f32 %v1034_v38  ;;  %v1003_v5 = vmul.f32 0.6931472, %v1354_v39 }
 0x177   : > { %v999_v37 = vmul.f32 0.6931472, %v1356_v63 }
 0x178   : > { %v1019_v16 = vmul.f32 0.33333334, %v1003_v5 }
 0x179   : > { %v1017_v33 = vmul.f32 0.33333334, %v999_v37 }
 0x17a   : > { %v1358_v7 = vpop.eup %1357  ;;  %v1050_v50 = vmul.f32 1.442695, %v1019_v16 }
 0x17b   : > { %1067 = vst.msk [vmem:[%s1693_s25 + $0x70] sm:$0xff] %vm1052_vm2, %v1358_v7  ;;  %v1046_v8 = vmul.f32 1.442695, %v1017_v33 }
 0x17c   : > { %v1360_v44 = vpop.eup %1359  ;;  %1361 = vpow2.f32 %v1050_v50 }
 0x17d   : > { %1060 = vst.msk [vmem:[%s1693_s25 + $0x38] sm:$0xff] %vm1052_vm2, %v1360_v44  ;;  %1363 = vpow2.f32 %v1046_v8 }
 0x182   : > { %v1362_v12 = vpop.eup %1361 }
 0x183   : > { %v1364_v57 = vpop.eup %1363  ;;  %1068 = vst.msk [vmem:[%s1693_s25 + $0x78] sm:$0xff] %vm1052_vm2, %v1362_v12 }
 0x184   : > { %1066 = vst.msk [vmem:[%s1693_s25 + $0x68] sm:$0xff] %vm1052_vm2, %v1364_v57 }
 0x185 PF: > { %s13_s14 = sadd.s32 1, %s1387_s14   ;;  %s1740_s12 = smov %s1383_s13 }
 0x186   : > { %p10_p5 = scmp.ge.s32.totalorder %s13_s14, 4   ;;  %s1741_s13 = smov %s1743_s15 }
 0x188   :  { %12 = sbr.rel (!%p10_p5) target bundleno = 2 (0x2), region = 70 }

// kernel: net_classifier_forward.3
= control target key start
LH: loop header
LB: loop body
LE: loop exit
PB: predicated region body
PF: predicated region fallthrough
CT: control target
= control target key end

     0   :  { %s824_s0 = inlined_call_operand.vmem [shape: f32[2,128], index: 0, kind: input, shape index: {}]   ;;  %s825_s1 = inlined_call_operand.vmem [shape: f32[128,512], index: 1, kind: input, shape index: {}]   ;;  %s826_s2 = inlined_call_operand.vmem [shape: f32[1,512], index: 2, kind: input, shape index: {}]   ;;  %s827_s3 = inlined_call_operand.vmem [shape: f32[512,128], index: 3, kind: input, shape index: {}]   ;;  %s828_s4 = inlined_call_operand.vmem [shape: f32[1,128], index: 4, kind: input, shape index: {}]   ;;  %s829_s5 = inlined_call_operand.hbm [shape: f32[2,128], index: 5, kind: output, shape index: {}]  }
   0x1   :  { %v82_v0 = vld [vmem:[%s825_s1 + $0x1e0] sm:$0xff]  ;;  %v83_v1 = vld [vmem:[%s825_s1 + $0x1e8] sm:$0xff]  ;;  %v84_v2 = vld [vmem:[%s825_s1 + $0x1f0] sm:$0xff] }
   0x2   :  { %96 = vmatpush.msra.mxu0 %v82_v0  ;;  %116 = vmatpush.msra.mxu1 %v83_v1  ;;  %v85_v3 = vld [vmem:[%s825_s1 + $0x1f8] sm:$0xff]  ;;  %v78_v4 = vld [vmem:[%s825_s1 + $0x1c0] sm:$0xff]  ;;  %v79_v5 = vld [vmem:[%s825_s1 + $0x1c8] sm:$0xff] }
   0x3   :  { %136 = vmatpush.msra.mxu2 %v84_v2  ;;  %156 = vmatpush.msra.mxu3 %v85_v3  ;;  %v80_v6 = vld [vmem:[%s825_s1 + $0x1d0] sm:$0xff]  ;;  %v81_v7 = vld [vmem:[%s825_s1 + $0x1d8] sm:$0xff]  ;;  %v74_v8 = vld [vmem:[%s825_s1 + $0x1a0] sm:$0xff] }
   0x4   :  { %97 = vmatpush.msra.mxu0 %v78_v4  ;;  %117 = vmatpush.msra.mxu1 %v79_v5  ;;  %v75_v9 = vld [vmem:[%s825_s1 + $0x1a8] sm:$0xff]  ;;  %v76_v10 = vld [vmem:[%s825_s1 + $0x1b0] sm:$0xff]  ;;  %v77_v11 = vld [vmem:[%s825_s1 + $0x1b8] sm:$0xff] }
   0x5   :  { %137 = vmatpush.msra.mxu2 %v80_v6  ;;  %157 = vmatpush.msra.mxu3 %v81_v7  ;;  %v70_v12 = vld [vmem:[%s825_s1 + $0x180] sm:$0xff]  ;;  %v71_v13 = vld [vmem:[%s825_s1 + $0x188] sm:$0xff]  ;;  %v72_v14 = vld [vmem:[%s825_s1 + $0x190] sm:$0xff] }
   0x6   :  { %98 = vmatpush.msra.mxu0 %v74_v8  ;;  %118 = vmatpush.msra.mxu1 %v75_v9  ;;  %v73_v15 = vld [vmem:[%s825_s1 + $0x198] sm:$0xff]  ;;  %v66_v16 = vld [vmem:[%s825_s1 + $0x160] sm:$0xff]  ;;  %v67_v17 = vld [vmem:[%s825_s1 + $0x168] sm:$0xff] }
   0x7   :  { %138 = vmatpush.msra.mxu2 %v76_v10  ;;  %158 = vmatpush.msra.mxu3 %v77_v11  ;;  %v68_v18 = vld [vmem:[%s825_s1 + $0x170] sm:$0xff]  ;;  %v69_v19 = vld [vmem:[%s825_s1 + $0x178] sm:$0xff]  ;;  %v62_v20 = vld [vmem:[%s825_s1 + $0x140] sm:$0xff] }
   0x8   :  { %99 = vmatpush.msra.mxu0 %v70_v12  ;;  %119 = vmatpush.msra.mxu1 %v71_v13  ;;  %v63_v21 = vld [vmem:[%s825_s1 + $0x148] sm:$0xff]  ;;  %v64_v22 = vld [vmem:[%s825_s1 + $0x150] sm:$0xff]  ;;  %v65_v23 = vld [vmem:[%s825_s1 + $0x158] sm:$0xff] }
   0x9   :  { %139 = vmatpush.msra.mxu2 %v72_v14  ;;  %159 = vmatpush.msra.mxu3 %v73_v15  ;;  %v58_v24 = vld [vmem:[%s825_s1 + $0x120] sm:$0xff]  ;;  %v59_v25 = vld [vmem:[%s825_s1 + $0x128] sm:$0xff]  ;;  %v60_v26 = vld [vmem:[%s825_s1 + $0x130] sm:$0xff] }
   0xa   :  { %100 = vmatpush.msra.mxu0 %v66_v16  ;;  %120 = vmatpush.msra.mxu1 %v67_v17  ;;  %v61_v27 = vld [vmem:[%s825_s1 + $0x138] sm:$0xff]  ;;  %v54_v28 = vld [vmem:[%s825_s1 + $0x100] sm:$0xff]  ;;  %v55_v29 = vld [vmem:[%s825_s1 + $0x108] sm:$0xff] }
   0xb   :  { %140 = vmatpush.msra.mxu2 %v68_v18  ;;  %160 = vmatpush.msra.mxu3 %v69_v19  ;;  %v56_v30 = vld [vmem:[%s825_s1 + $0x110] sm:$0xff]  ;;  %v57_v31 = vld [vmem:[%s825_s1 + $0x118] sm:$0xff]  ;;  %v50_v32 = vld [vmem:[%s825_s1 + $0xe0] sm:$0xff] }
   0xc   :  { %101 = vmatpush.msra.mxu0 %v62_v20  ;;  %121 = vmatpush.msra.mxu1 %v63_v21  ;;  %v51_v33 = vld [vmem:[%s825_s1 + $0xe8] sm:$0xff]  ;;  %v52_v34 = vld [vmem:[%s825_s1 + $0xf0] sm:$0xff]  ;;  %v53_v35 = vld [vmem:[%s825_s1 + $0xf8] sm:$0xff] }
   0xd   :  { %141 = vmatpush.msra.mxu2 %v64_v22  ;;  %161 = vmatpush.msra.mxu3 %v65_v23  ;;  %v46_v36 = vld [vmem:[%s825_s1 + $0xc0] sm:$0xff]  ;;  %v47_v37 = vld [vmem:[%s825_s1 + $0xc8] sm:$0xff]  ;;  %v48_v38 = vld [vmem:[%s825_s1 + $0xd0] sm:$0xff] }
   0xe   :  { %102 = vmatpush.msra.mxu0 %v58_v24  ;;  %122 = vmatpush.msra.mxu1 %v59_v25  ;;  %v49_v39 = vld [vmem:[%s825_s1 + $0xd8] sm:$0xff]  ;;  %v42_v40 = vld [vmem:[%s825_s1 + $0xa0] sm:$0xff]  ;;  %v43_v41 = vld [vmem:[%s825_s1 + $0xa8] sm:$0xff] }
   0xf   :  { %142 = vmatpush.msra.mxu2 %v60_v26  ;;  %162 = vmatpush.msra.mxu3 %v61_v27  ;;  %v44_v42 = vld [vmem:[%s825_s1 + $0xb0] sm:$0xff]  ;;  %v45_v43 = vld [vmem:[%s825_s1 + $0xb8] sm:$0xff]  ;;  %v38_v44 = vld [vmem:[%s825_s1 + $0x80] sm:$0xff] }
  0x10   :  { %103 = vmatpush.msra.mxu0 %v54_v28  ;;  %123 = vmatpush.msra.mxu1 %v55_v29  ;;  %v39_v45 = vld [vmem:[%s825_s1 + $0x88] sm:$0xff]  ;;  %v40_v46 = vld [vmem:[%s825_s1 + $0x90] sm:$0xff]  ;;  %v41_v47 = vld [vmem:[%s825_s1 + $0x98] sm:$0xff] }
  0x11   :  { %143 = vmatpush.msra.mxu2 %v56_v30  ;;  %163 = vmatpush.msra.mxu3 %v57_v31  ;;  %v34_v48 = vld [vmem:[%s825_s1 + $0x60] sm:$0xff]  ;;  %v35_v49 = vld [vmem:[%s825_s1 + $0x68] sm:$0xff]  ;;  %v36_v50 = vld [vmem:[%s825_s1 + $0x70] sm:$0xff] }
  0x12   :  { %104 = vmatpush.msra.mxu0 %v50_v32  ;;  %124 = vmatpush.msra.mxu1 %v51_v33  ;;  %v37_v51 = vld [vmem:[%s825_s1 + $0x78] sm:$0xff]  ;;  %v30_v52 = vld [vmem:[%s825_s1 + $0x40] sm:$0xff]  ;;  %v31_v53 = vld [vmem:[%s825_s1 + $0x48] sm:$0xff] }
  0x13   :  { %144 = vmatpush.msra.mxu2 %v52_v34  ;;  %164 = vmatpush.msra.mxu3 %v53_v35  ;;  %v32_v54 = vld [vmem:[%s825_s1 + $0x50] sm:$0xff]  ;;  %v33_v55 = vld [vmem:[%s825_s1 + $0x58] sm:$0xff]  ;;  %v26_v56 = vld [vmem:[%s825_s1 + $0x20] sm:$0xff] }
  0x14   :  { %105 = vmatpush.msra.mxu0 %v46_v36  ;;  %125 = vmatpush.msra.mxu1 %v47_v37  ;;  %v27_v57 = vld [vmem:[%s825_s1 + $0x28] sm:$0xff]  ;;  %v28_v58 = vld [vmem:[%s825_s1 + $0x30] sm:$0xff]  ;;  %v29_v59 = vld [vmem:[%s825_s1 + $0x38] sm:$0xff] }
  0x15   :  { %145 = vmatpush.msra.mxu2 %v48_v38  ;;  %165 = vmatpush.msra.mxu3 %v49_v39  ;;  %v22_v60 = vld [vmem:[%s825_s1] sm:$0xff]  ;;  %v23_v61 = vld [vmem:[%s825_s1 + $0x8] sm:$0xff]  ;;  %v24_v62 = vld [vmem:[%s825_s1 + $0x10] sm:$0xff] }
  0x16   :  { %106 = vmatpush.msra.mxu0 %v42_v40  ;;  %126 = vmatpush.msra.mxu1 %v43_v41  ;;  %v25_v63 = vld [vmem:[%s825_s1 + $0x18] sm:$0xff] }
  0x17   :  { %146 = vmatpush.msra.mxu2 %v44_v42  ;;  %166 = vmatpush.msra.mxu3 %v45_v43 }
  0x18   :  { %107 = vmatpush.msra.mxu0 %v38_v44  ;;  %127 = vmatpush.msra.mxu1 %v39_v45 }
  0x19   :  { %147 = vmatpush.msra.mxu2 %v40_v46  ;;  %167 = vmatpush.msra.mxu3 %v41_v47 }
  0x1a   :  { %108 = vmatpush.msra.mxu0 %v34_v48  ;;  %128 = vmatpush.msra.mxu1 %v35_v49 }
  0x1b   :  { %148 = vmatpush.msra.mxu2 %v36_v50  ;;  %168 = vmatpush.msra.mxu3 %v37_v51 }
  0x1c   :  { %109 = vmatpush.msra.mxu0 %v30_v52  ;;  %129 = vmatpush.msra.mxu1 %v31_v53 }
  0x1d   :  { %149 = vmatpush.msra.mxu2 %v32_v54  ;;  %169 = vmatpush.msra.mxu3 %v33_v55 }
  0x1e   :  { %110 = vmatpush.msra.mxu0 %v26_v56  ;;  %130 = vmatpush.msra.mxu1 %v27_v57 }
  0x1f   :  { %10 = vsyncpa [#allocation3], 0  ;;  %150 = vmatpush.msra.mxu2 %v28_v58  ;;  %170 = vmatpush.msra.mxu3 %v29_v59  ;;  %v21_v0 = vld [vmem:[%s824_s0] sm:$0x3]  ;;  %v211_v1 = vld [vmem:[%s827_s3 + $0x78] sm:$0xff]  ;;  %s397_s18 = smov [#allocation2]  }
  0x20   :  { %111 = vmatpush.msra.mxu0 %v22_v60  ;;  %131 = vmatpush.msra.mxu1 %v23_v61  ;;  %v227_v2 = vld [vmem:[%s827_s3 + $0xf8] sm:$0xff]  ;;  %v210_v5 = vld [vmem:[%s827_s3 + $0x70] sm:$0xff]  ;;  %v209_v9 = vld [vmem:[%s827_s3 + $0x68] sm:$0xff]  ;;  %s350_s19 = sshll.u32 %s397_s18, 4  ;;  %s352_s22 = sshll.u32 %s829_s5, 4  ;;  %s351_s19 = int_to_ptr.vmem [resolvable:$true] %s350_s19  ;;  %s353_s22 = int_to_ptr.hbm [resolvable:$true] %s352_s22 }
  0x21   :  { %151 = vmatpush.msra.mxu2 %v24_v62  ;;  %171 = vmatpush.msra.mxu3 %v25_v63  ;;  %v243_v3 = vld [vmem:[%s827_s3 + $0x178] sm:$0xff]  ;;  %v226_v6 = vld [vmem:[%s827_s3 + $0xf0] sm:$0xff]  ;;  %v225_v10 = vld [vmem:[%s827_s3 + $0xe8] sm:$0xff] }
  0x22   :  { %112 = vmatmul.f32.vlgmr.msra.gmra.mxu0 %v21_v0  ;;  %132 = vmatmul.f32.vlgmr.msra.gmra.mxu1 %v21_v0  ;;  %v259_v4 = vld [vmem:[%s827_s3 + $0x1f8] sm:$0xff]  ;;  %v242_v7 = vld [vmem:[%s827_s3 + $0x170] sm:$0xff]  ;;  %v241_v11 = vld [vmem:[%s827_s3 + $0x168] sm:$0xff] }
  0x23   :  { %152 = vmatmul.f32.vlgmr.msra.gmra.mxu2 %v21_v0  ;;  %172 = vmatmul.f32.vlgmr.msra.gmra.mxu3 %v21_v0  ;;  %v258_v8 = vld [vmem:[%s827_s3 + $0x1f0] sm:$0xff]  ;;  %v257_v12 = vld [vmem:[%s827_s3 + $0x1e8] sm:$0xff]  ;;  %v208_v13 = vld [vmem:[%s827_s3 + $0x60] sm:$0xff] }
  0x24   :  { %264 = vmatpush.msrb.mxu0 %v211_v1  ;;  %284 = vmatpush.msrb.mxu1 %v227_v2  ;;  %v224_v14 = vld [vmem:[%s827_s3 + $0xe0] sm:$0xff]  ;;  %v207_v17 = vld [vmem:[%s827_s3 + $0x58] sm:$0xff]  ;;  %v206_v19 = vld [vmem:[%s827_s3 + $0x50] sm:$0xff] }
  0x25   :  { %304 = vmatpush.msrb.mxu2 %v243_v3  ;;  %324 = vmatpush.msrb.mxu3 %v259_v4  ;;  %v240_v15 = vld [vmem:[%s827_s3 + $0x160] sm:$0xff]  ;;  %v223_v18 = vld [vmem:[%s827_s3 + $0xd8] sm:$0xff]  ;;  %v222_v20 = vld [vmem:[%s827_s3 + $0xd0] sm:$0xff] }
  0x26   :  { %265 = vmatpush.msrb.mxu0 %v210_v5  ;;  %285 = vmatpush.msrb.mxu1 %v226_v6  ;;  %v256_v16 = vld [vmem:[%s827_s3 + $0x1e0] sm:$0xff]  ;;  %v205_v21 = vld [vmem:[%s827_s3 + $0x48] sm:$0xff]  ;;  %v239_v25 = vld [vmem:[%s827_s3 + $0x158] sm:$0xff] }
  0x27   :  { %305 = vmatpush.msrb.mxu2 %v242_v7  ;;  %325 = vmatpush.msrb.mxu3 %v258_v8  ;;  %v221_v22 = vld [vmem:[%s827_s3 + $0xc8] sm:$0xff]  ;;  %v204_v23 = vld [vmem:[%s827_s3 + $0x40] sm:$0xff]  ;;  %v255_v26 = vld [vmem:[%s827_s3 + $0x1d8] sm:$0xff] }
  0x28   :  { %266 = vmatpush.msrb.mxu0 %v209_v9  ;;  %286 = vmatpush.msrb.mxu1 %v225_v10  ;;  %v220_v24 = vld [vmem:[%s827_s3 + $0xc0] sm:$0xff]  ;;  %v203_v27 = vld [vmem:[%s827_s3 + $0x38] sm:$0xff]  ;;  %v238_v29 = vld [vmem:[%s827_s3 + $0x150] sm:$0xff] }
  0x29   :  { %306 = vmatpush.msrb.mxu2 %v241_v11  ;;  %326 = vmatpush.msrb.mxu3 %v257_v12  ;;  %v219_v28 = vld [vmem:[%s827_s3 + $0xb8] sm:$0xff]  ;;  %v254_v30 = vld [vmem:[%s827_s3 + $0x1d0] sm:$0xff]  ;;  %v237_v33 = vld [vmem:[%s827_s3 + $0x148] sm:$0xff] }
  0x2a   :  { %267 = vmatpush.msrb.mxu0 %v208_v13  ;;  %287 = vmatpush.msrb.mxu1 %v224_v14  ;;  %v202_v31 = vld [vmem:[%s827_s3 + $0x30] sm:$0xff]  ;;  %v253_v34 = vld [vmem:[%s827_s3 + $0x1c8] sm:$0xff]  ;;  %v236_v37 = vld [vmem:[%s827_s3 + $0x140] sm:$0xff] }
  0x2b   :  { %307 = vmatpush.msrb.mxu2 %v240_v15  ;;  %327 = vmatpush.msrb.mxu3 %v256_v16  ;;  %v218_v32 = vld [vmem:[%s827_s3 + $0xb0] sm:$0xff]  ;;  %v201_v35 = vld [vmem:[%s827_s3 + $0x28] sm:$0xff]  ;;  %v252_v38 = vld [vmem:[%s827_s3 + $0x1c0] sm:$0xff] }
  0x2c   :  { %268 = vmatpush.msrb.mxu0 %v207_v17  ;;  %288 = vmatpush.msrb.mxu1 %v223_v18  ;;  %v217_v36 = vld [vmem:[%s827_s3 + $0xa8] sm:$0xff]  ;;  %v200_v39 = vld [vmem:[%s827_s3 + $0x20] sm:$0xff]  ;;  %v235_v41 = vld [vmem:[%s827_s3 + $0x138] sm:$0xff] }
  0x2d   :  { %308 = vmatpush.msrb.mxu2 %v239_v25  ;;  %328 = vmatpush.msrb.mxu3 %v255_v26  ;;  %v216_v40 = vld [vmem:[%s827_s3 + $0xa0] sm:$0xff]  ;;  %v251_v42 = vld [vmem:[%s827_s3 + $0x1b8] sm:$0xff]  ;;  %v234_v45 = vld [vmem:[%s827_s3 + $0x130] sm:$0xff] }
  0x2e   :  { %269 = vmatpush.msrb.mxu0 %v206_v19  ;;  %289 = vmatpush.msrb.mxu1 %v222_v20  ;;  %v199_v43 = vld [vmem:[%s827_s3 + $0x18] sm:$0xff]  ;;  %v250_v46 = vld [vmem:[%s827_s3 + $0x1b0] sm:$0xff]  ;;  %v233_v49 = vld [vmem:[%s827_s3 + $0x128] sm:$0xff] }
  0x2f   :  { %309 = vmatpush.msrb.mxu2 %v238_v29  ;;  %329 = vmatpush.msrb.mxu3 %v254_v30  ;;  %v215_v44 = vld [vmem:[%s827_s3 + $0x98] sm:$0xff]  ;;  %v198_v47 = vld [vmem:[%s827_s3 + $0x10] sm:$0xff]  ;;  %v249_v50 = vld [vmem:[%s827_s3 + $0x1a8] sm:$0xff] }
  0x30   :  { %270 = vmatpush.msrb.mxu0 %v205_v21  ;;  %290 = vmatpush.msrb.mxu1 %v221_v22  ;;  %v214_v48 = vld [vmem:[%s827_s3 + $0x90] sm:$0xff]  ;;  %v197_v51 = vld [vmem:[%s827_s3 + $0x8] sm:$0xff]  ;;  %v232_v53 = vld [vmem:[%s827_s3 + $0x120] sm:$0xff] }
  0x31   :  { %310 = vmatpush.msrb.mxu2 %v237_v33  ;;  %330 = vmatpush.msrb.mxu3 %v253_v34  ;;  %v213_v52 = vld [vmem:[%s827_s3 + $0x88] sm:$0xff]  ;;  %v248_v54 = vld [vmem:[%s827_s3 + $0x1a0] sm:$0xff]  ;;  %v231_v57 = vld [vmem:[%s827_s3 + $0x118] sm:$0xff] }
  0x32   :  { %271 = vmatpush.msrb.mxu0 %v204_v23  ;;  %291 = vmatpush.msrb.mxu1 %v220_v24  ;;  %v196_v55 = vld [vmem:[%s827_s3] sm:$0xff]  ;;  %v247_v58 = vld [vmem:[%s827_s3 + $0x198] sm:$0xff]  ;;  %v230_v59 = vld [vmem:[%s827_s3 + $0x110] sm:$0xff] }
  0x33   :  { %311 = vmatpush.msrb.mxu2 %v236_v37  ;;  %331 = vmatpush.msrb.mxu3 %v252_v38  ;;  %v212_v56 = vld [vmem:[%s827_s3 + $0x80] sm:$0xff]  ;;  %v246_v60 = vld [vmem:[%s827_s3 + $0x190] sm:$0xff]  ;;  %v229_v61 = vld [vmem:[%s827_s3 + $0x108] sm:$0xff] }
  0x34   :  { %272 = vmatpush.msrb.mxu0 %v203_v27  ;;  %292 = vmatpush.msrb.mxu1 %v219_v28  ;;  %v245_v62 = vld [vmem:[%s827_s3 + $0x188] sm:$0xff]  ;;  %v228_v63 = vld [vmem:[%s827_s3 + $0x100] sm:$0xff] }
  0x35   :  { %312 = vmatpush.msrb.mxu2 %v235_v41  ;;  %332 = vmatpush.msrb.mxu3 %v251_v42  ;;  %v244_v0 = vld [vmem:[%s827_s3 + $0x180] sm:$0xff] }
  0x36   :  { %273 = vmatpush.msrb.mxu0 %v202_v31  ;;  %293 = vmatpush.msrb.mxu1 %v218_v32  ;;  %v86_v1 = vld [vmem:[%s826_s2] sm:$0xf] }
  0x37   :  { %313 = vmatpush.msrb.mxu2 %v234_v45  ;;  %333 = vmatpush.msrb.mxu3 %v250_v46  ;;  %v88_v2 = vperm.slane %v86_v1, 0  ;;  %v89_v3 = vperm.slane %v86_v1, 1  ;;  %v90_v10 = vperm.slane %v86_v1, 2  ;;  %v91_v11 = vperm.slane %v86_v1, 3  ;;  %v362_v34 = vld [vmem:[%s828_s4] ss:$0 sm:$0xff] }
  0x38   :  { %274 = vmatpush.msrb.mxu0 %v201_v35  ;;  %294 = vmatpush.msrb.mxu1 %v217_v36 }
  0x39   :  { %314 = vmatpush.msrb.mxu2 %v233_v49  ;;  %334 = vmatpush.msrb.mxu3 %v249_v50 }
  0x3a   :  { %275 = vmatpush.msrb.mxu0 %v200_v39  ;;  %295 = vmatpush.msrb.mxu1 %v216_v40 }
  0x3b   :  { %315 = vmatpush.msrb.mxu2 %v232_v53  ;;  %335 = vmatpush.msrb.mxu3 %v248_v54 }
  0x3c   :  { %276 = vmatpush.msrb.mxu0 %v199_v43  ;;  %296 = vmatpush.msrb.mxu1 %v215_v44 }
  0x3d   :  { %316 = vmatpush.msrb.mxu2 %v231_v57  ;;  %336 = vmatpush.msrb.mxu3 %v247_v58 }
  0x3e   :  { %277 = vmatpush.msrb.mxu0 %v198_v47  ;;  %297 = vmatpush.msrb.mxu1 %v214_v48 }
  0x3f   :  { %317 = vmatpush.msrb.mxu2 %v230_v59  ;;  %337 = vmatpush.msrb.mxu3 %v246_v60 }
  0x40   :  { %278 = vmatpush.msrb.mxu0 %v197_v51  ;;  %298 = vmatpush.msrb.mxu1 %v213_v52 }
  0x41   :  { %318 = vmatpush.msrb.mxu2 %v229_v61  ;;  %338 = vmatpush.msrb.mxu3 %v245_v62 }
  0x42   :  { %279 = vmatpush.msrb.mxu0 %v196_v55  ;;  %299 = vmatpush.msrb.mxu1 %v212_v56 }
  0x43   :  { %319 = vmatpush.msrb.mxu2 %v228_v63  ;;  %339 = vmatpush.msrb.mxu3 %v244_v0 }
  0x9f   :  { %v113_v4 = vpop.f32.mrf.mxu0  ;;  %v133_v5 = vpop.f32.mrf.mxu1 }
  0xa0   :  { %v114_v6 = vadd.f32 %v113_v4, %v88_v2  ;;  %v134_v7 = vadd.f32 %v133_v5, %v89_v3 }
  0xa2   :  { %v176_v8 = vmul.f32 0.5, %v114_v6  ;;  %v177_v9 = vmul.f32 0.5, %v134_v7 }
  0xa4   :  { %363 = vtanh.f32 %v176_v8 }
  0xa5   :  { %365 = vtanh.f32 %v177_v9 }
  0xa6   :  { %v153_v12 = vpop.f32.mrf.mxu2  ;;  %v173_v13 = vpop.f32.mrf.mxu3 }
  0xa7   :  { %v154_v14 = vadd.f32 %v153_v12, %v90_v10  ;;  %v174_v15 = vadd.f32 %v173_v13, %v91_v11 }
  0xa9   :  { %v178_v16 = vmul.f32 0.5, %v154_v14  ;;  %v179_v17 = vmul.f32 0.5, %v174_v15 }
  0xaa   :  { %v364_v18 = vpop.eup %363 }
  0xab   :  { %v366_v19 = vpop.eup %365  ;;  %v184_v20 = vadd.f32 1.0, %v364_v18  ;;  %367 = vtanh.f32 %v178_v16 }
  0xac   :  { %v185_v21 = vadd.f32 1.0, %v366_v19  ;;  %369 = vtanh.f32 %v179_v17 }
  0xad   :  { %v188_v22 = vmul.f32 0.5, %v184_v20 }
  0xae   :  { %v189_v23 = vmul.f32 0.5, %v185_v21 }
  0xaf   :  { %v192_v24 = vmul.f32 %v188_v22, %v114_v6 }
  0xb0   :  { %v193_v25 = vmul.f32 %v189_v23, %v134_v7 }
  0xb1   :  { %v368_v26 = vpop.eup %367  ;;  %280 = vmatmul.f32.vlgmr.msrb.gmra.mxu0 %v192_v24 }
  0xb2   :  { %v370_v27 = vpop.eup %369  ;;  %v186_v28 = vadd.f32 1.0, %v368_v26  ;;  %300 = vmatmul.f32.vlgmr.msrb.gmra.mxu1 %v193_v25 }
  0xb3   :  { %v187_v29 = vadd.f32 1.0, %v370_v27 }
  0xb4   :  { %v190_v30 = vmul.f32 0.5, %v186_v28 }
  0xb5   :  { %v191_v31 = vmul.f32 0.5, %v187_v29 }
  0xb6   :  { %v194_v32 = vmul.f32 %v190_v30, %v154_v14 }
  0xb7   :  { %v195_v33 = vmul.f32 %v191_v31, %v174_v15 }
  0xb8   :  { %320 = vmatmul.f32.vlgmr.msrb.gmra.mxu2 %v194_v32 }
  0xb9   :  { %340 = vmatmul.f32.vlgmr.msrb.gmra.mxu3 %v195_v33 }
 0x12e   :  { %v281_v35 = vpop.f32.mrf.mxu0 }
 0x12f   :  { %v282_v36 = vadd.f32 %v362_v34, %v281_v35  ;;  %v301_v37 = vpop.f32.mrf.mxu1 }
 0x131   :  { %v302_v38 = vadd.f32 %v301_v37, %v282_v36 }
 0x13b   :  { %v321_v39 = vpop.f32.mrf.mxu2 }
 0x13c   :  { %v322_v40 = vadd.f32 %v321_v39, %v302_v38  ;;  %v341_v41 = vpop.f32.mrf.mxu3 }
 0x13e   :  { %v342_v42 = vadd.f32 %v341_v41, %v322_v40 }
 0x140   :  { %344 = vst [vmem:[#allocation2] sm:$0x3] %v342_v42 }
 0x141   :  { %355 = dma.vmem_to_hbm [thread:$0]  %s351_s19, 32, %s353_s22, [#allocation3]  }
 0x142   :  { %395 = dma.done.wait [#allocation3], 32  }
 0x143   :  { %396 = vsyncadd [#allocation3], 4294967264 }
 0x144   :  { %360 = vsyncpa [#allocation3], 1 }

</bundles_post_ra>
